<compile_context>
chip_gen: v6e
topology: v6e:2x2x1
jax: 0.10.0
libtpu: 0.0.40
codegen_flags: <defaults>
</compile_context>

<pallas_src>
import jax
import jax.numpy as jnp
from jax import lax
from jax.experimental import pallas as pl
from jax.experimental.pallas import tpu as pltpu

BIGNET_DIM = 128   # small, lane-aligned stand-in for the real BIGNET_DIM
LORA_DIM = 32
GROUP_SIZE = 16
N_BLOCKS = 6
EPS = 1e-5         # torch.nn.LayerNorm default eps


# ------------------------------------------------------------------
# 4-bit block quantization (parameter setup, plain JAX glue)
# ------------------------------------------------------------------
def block_quantize_4bit(w_flat, group_size=GROUP_SIZE):
    g = w_flat.reshape(-1, group_size)
    norm = jnp.max(jnp.abs(g), axis=-1, keepdims=True)
    # Tiny floor only guards zero-norm groups (never hit with uniform init);
    # the PyTorch reference divides by the raw norm.
    norm = jnp.maximum(norm, 1e-8)
    q = jnp.clip(jnp.round((g + norm) / (2.0 * norm) * 15.0), 0, 15).astype(jnp.int8)
    return q, norm.astype(jnp.float16)


def block_dequantize_4bit(q, norm):
    norm32 = norm.astype(jnp.float32)
    return (q.astype(jnp.float32) / 15.0 * 2.0 * norm32 - norm32).reshape(-1)


# ------------------------------------------------------------------
# Fused Pallas kernel: the whole network (6 blocks) in one invocation.
#   x_ref   : (B, D)            f32
#   wa_ref  : (18, D, D+L)      bf16   [W^T | lora_a^T] per linear
#   bb_ref  : (18, L, D)        bf16   lora_b^T per linear
#   vec_ref : (6, 8, D)         f32    rows 0-2: biases, 3: gamma, 4: beta
#   o_ref   : (B, D)            f32
# ------------------------------------------------------------------
def fused_net_kernel(x_ref, wa_ref, bb_ref, vec_ref, o_ref):
    D = BIGNET_DIM
    x = x_ref[...]                              # (B, D) f32

    for blk in range(N_BLOCKS):                 # fully unrolled (static)
        v = vec_ref[blk]                        # (8, D) f32
        h = x
        for l in range(3):
            idx = blk * 3 + l
            hb = h.astype(jnp.bfloat16)
            # One MXU pass produces [base | lora_mid]  -> (B, D+L) f32
            fused = jnp.dot(hb, wa_ref[idx], preferred_element_type=jnp.float32)
            base = fused[:, :D] + v[l:l + 1, :]                 # bias add, f32
            lora = jnp.dot(fused[:, D:].astype(jnp.bfloat16),   # (B, L) @ (L, D)
                           bb_ref[idx],
                           preferred_element_type=jnp.float32)
            h = base + lora
            if l < 2:                           # ReLU after linears 1 & 2 only
                h = jnp.maximum(h, 0.0)

        y = h + x                               # residual, f32

        if blk < N_BLOCKS - 1:                  # LayerNorm skipped statically on last block
            mean = jnp.mean(y, axis=-1, keepdims=True)
            var = jnp.mean(jnp.square(y - mean), axis=-1, keepdims=True)
            y = (y - mean) * lax.rsqrt(var + EPS) * v[3:4, :] + v[4:5, :]

        x = y

    o_ref[...] = x


def qlora_bignet_forward(x, packed):
    B, D = x.shape
    vmem = pltpu.MemorySpace.VMEM
    return pl.pallas_call(
        fused_net_kernel,
        out_shape=jax.ShapeDtypeStruct((B, D), jnp.float32),
        in_specs=[pl.BlockSpec(memory_space=vmem)] * 4,
        out_specs=pl.BlockSpec(memory_space=vmem),
    )(x, packed["wa"], packed["bb"], packed["vec"])


# ------------------------------------------------------------------
# Parameter construction (deterministic, mirrors the PyTorch __init__),
# plus one-time packing into the kernel operand layout.
# ------------------------------------------------------------------
def init_qlora_linear(key, in_f, out_f, lora_dim, group_size, zero_lora_b=True):
    k_w, k_b, k_a, k_bb = jax.random.split(key, 4)
    bound = 1.0 / (in_f ** 0.5)
    # base Linear weight/bias (torch default uniform init), then 4-bit round-trip
    w = jax.random.uniform(k_w, (out_f, in_f), jnp.float32, -bound, bound)
    q, norm = block_quantize_4bit(w.reshape(-1), group_size)
    w_deq = block_dequantize_4bit(q, norm).reshape(out_f, in_f)
    bias = jax.random.uniform(k_b, (out_f,), jnp.float32, -bound, bound)
    # LoRA init per the module: lora_a ~ N(0, 0.01), lora_b = 0
    lora_a = 0.01 * jax.random.normal(k_a, (lora_dim, in_f), jnp.float32)
    if zero_lora_b:
        lora_b = jnp.zeros((out_f, lora_dim), jnp.float32)
    else:
        # Optional nonzero lora_b so tests exercise the LoRA matmul path.
        lora_b = 0.01 * jax.random.normal(k_bb, (out_f, lora_dim), jnp.float32)
    return w_deq, bias, lora_a, lora_b


def build_params(key, zero_lora_b=True):
    keys = jax.random.split(key, N_BLOCKS * 3)
    raw = []
    ki = 0
    for _ in range(N_BLOCKS):
        layers = []
        for _ in range(3):
            layers.append(init_qlora_linear(keys[ki], BIGNET_DIM, BIGNET_DIM,
                                            LORA_DIM, GROUP_SIZE, zero_lora_b))
            ki += 1
        raw.append(layers)

    # Pack kernel operands: pre-transposed bf16 MXU weights + one small-vector slab.
    wa_list, bb_list, vec_list = [], [], []
    for b in range(N_BLOCKS):
        v = jnp.zeros((8, BIGNET_DIM), jnp.float32)
        for l in range(3):
            w_deq, bias, lora_a, lora_b = raw[b][l]
            wa_list.append(jnp.concatenate([w_deq.T, lora_a.T], axis=1)
                           .astype(jnp.bfloat16))              # (D, D+L)
            bb_list.append(lora_b.T.astype(jnp.bfloat16))       # (L, D)
            v = v.at[l].set(bias)
        v = v.at[3].set(jnp.ones((BIGNET_DIM,), jnp.float32))   # LayerNorm gamma = 1
        # row 4 (beta) stays 0; rows 5-7 are sublane padding
        vec_list.append(v)

    packed = {
        "wa": jnp.stack(wa_list),    # (18, D, D+L) bf16
        "bb": jnp.stack(bb_list),    # (18, L, D)   bf16
        "vec": jnp.stack(vec_list),  # (6, 8, D)    f32
    }
    return packed, raw


# ------------------------------------------------------------------
# Pure-JAX f32 reference of the PyTorch forward (for validation).
# ------------------------------------------------------------------
def reference_forward(x, raw):
    h = x
    for blk in range(N_BLOCKS):
        y = h
        for l in range(3):
            w_deq, bias, lora_a, lora_b = raw[blk][l]
            base = y @ w_deq.T + bias
            lora = (y @ lora_a.T) @ lora_b.T
            y = base + lora
            if l < 2:
                y = jnp.maximum(y, 0.0)
        h = y + h
        if blk < N_BLOCKS - 1:
            mean = jnp.mean(h, axis=-1, keepdims=True)
            var = jnp.mean(jnp.square(h - mean), axis=-1, keepdims=True)
            h = (h - mean) / jnp.sqrt(var + EPS)   # gamma=1, beta=0
    return h


if __name__ == "__main__":
    key = jax.random.PRNGKey(0)
    k_x, k_p = jax.random.split(key)

    B = 8
    x = jax.random.normal(k_x, (B, BIGNET_DIM), jnp.float32)
    # Module default inits lora_b = 0 (LoRA path would be a numeric no-op);
    # use nonzero lora_b here so the LoRA matmuls are actually exercised.
    packed, raw = build_params(k_p, zero_lora_b=False)

    out = jax.block_until_ready(qlora_bignet_forward(x, packed))
    assert out.shape == (B, BIGNET_DIM) and out.dtype == jnp.float32
    assert bool(jnp.all(jnp.isfinite(out)))

    # bf16 MXU operands on top of the 4-bit quantization -> loose tolerance.
    ref = reference_forward(x, raw)
    max_err = float(jnp.max(jnp.abs(out - ref)))
    assert max_err < 0.2, f"kernel vs f32 reference max abs diff = {max_err}"

    print("KERNEL_OK")
</pallas_src>

<mosaic_0001>
module attributes {stable_mosaic.version = 11 : i64} {
  func.func @fused_net_kernel(%arg0: memref<8x128xf32, #tpu.memory_space<vmem>>, %arg1: memref<18x128x160xbf16, #tpu.memory_space<vmem>>, %arg2: memref<18x32x128xbf16, #tpu.memory_space<vmem>>, %arg3: memref<6x8x128xf32, #tpu.memory_space<vmem>>, %arg4: memref<8x128xf32, #tpu.memory_space<vmem>>) attributes {dimension_semantics = [], scalar_prefetch = 0 : i64, scratch_operands = 0 : i64, tpu.core_type = #tpu.core_type<tc>} {
    %c0 = arith.constant 0 : index
    %c0_0 = arith.constant 0 : index
    %0 = vector.load %arg0[%c0, %c0_0] : memref<8x128xf32, #tpu.memory_space<vmem>>, vector<8x128xf32>
    %c0_1 = arith.constant 0 : index
    %c0_2 = arith.constant 0 : index
    %c0_3 = arith.constant 0 : index
    %1 = vector.load %arg3[%c0_1, %c0_2, %c0_3] : memref<6x8x128xf32, #tpu.memory_space<vmem>>, vector<1x8x128xf32>
    %2 = vector.shape_cast %1 : vector<1x8x128xf32> to vector<8x128xf32>
    %3 = arith.truncf %0 : vector<8x128xf32> to vector<8x128xbf16>
    %c0_4 = arith.constant 0 : index
    %c0_5 = arith.constant 0 : index
    %c0_6 = arith.constant 0 : index
    %4 = vector.load %arg1[%c0_4, %c0_5, %c0_6] : memref<18x128x160xbf16, #tpu.memory_space<vmem>>, vector<1x128x160xbf16>
    %5 = vector.shape_cast %4 : vector<1x128x160xbf16> to vector<128x160xbf16>
    %cst = arith.constant dense<0.000000e+00> : vector<8x160xf32>
    %6 = tpu.matmul %3, %5, %cst {dimension_numbers = #tpu.dot_dimension_numbers<[1], [0], [0], [1], [0, 0, 1, 1], [], []>} : vector<8x128xbf16>, vector<128x160xbf16>, vector<8x160xf32> -> vector<8x160xf32>
    %7 = vector.extract_strided_slice %6 {offsets = [0, 0], sizes = [8, 128], strides = [1, 1]} : vector<8x160xf32> to vector<8x128xf32>
    %8 = vector.extract_strided_slice %2 {offsets = [0, 0], sizes = [1, 128], strides = [1, 1]} : vector<8x128xf32> to vector<1x128xf32>
    %9 = vector.broadcast %8 : vector<1x128xf32> to vector<8x128xf32>
    %10 = arith.addf %7, %9 : vector<8x128xf32>
    %11 = vector.extract_strided_slice %6 {offsets = [0, 128], sizes = [8, 32], strides = [1, 1]} : vector<8x160xf32> to vector<8x32xf32>
    %12 = arith.truncf %11 : vector<8x32xf32> to vector<8x32xbf16>
    %c0_7 = arith.constant 0 : index
    %c0_8 = arith.constant 0 : index
    %c0_9 = arith.constant 0 : index
    %13 = vector.load %arg2[%c0_7, %c0_8, %c0_9] : memref<18x32x128xbf16, #tpu.memory_space<vmem>>, vector<1x32x128xbf16>
    %14 = vector.shape_cast %13 : vector<1x32x128xbf16> to vector<32x128xbf16>
    %cst_10 = arith.constant dense<0.000000e+00> : vector<8x128xf32>
    %15 = tpu.matmul %12, %14, %cst_10 {dimension_numbers = #tpu.dot_dimension_numbers<[1], [0], [0], [1], [0, 0, 1, 1], [], []>} : vector<8x32xbf16>, vector<32x128xbf16>, vector<8x128xf32> -> vector<8x128xf32>
    %16 = arith.addf %10, %15 : vector<8x128xf32>
    %cst_11 = arith.constant 0.000000e+00 : f32
    %17 = vector.broadcast %cst_11 : f32 to vector<8x128xf32>
    %18 = arith.maximumf %16, %17 : vector<8x128xf32>
    %19 = arith.truncf %18 : vector<8x128xf32> to vector<8x128xbf16>
    %c1 = arith.constant 1 : index
    %c0_12 = arith.constant 0 : index
    %c0_13 = arith.constant 0 : index
    %20 = vector.load %arg1[%c1, %c0_12, %c0_13] : memref<18x128x160xbf16, #tpu.memory_space<vmem>>, vector<1x128x160xbf16>
    %21 = vector.shape_cast %20 : vector<1x128x160xbf16> to vector<128x160xbf16>
    %cst_14 = arith.constant dense<0.000000e+00> : vector<8x160xf32>
    %22 = tpu.matmul %19, %21, %cst_14 {dimension_numbers = #tpu.dot_dimension_numbers<[1], [0], [0], [1], [0, 0, 1, 1], [], []>} : vector<8x128xbf16>, vector<128x160xbf16>, vector<8x160xf32> -> vector<8x160xf32>
    %23 = vector.extract_strided_slice %22 {offsets = [0, 0], sizes = [8, 128], strides = [1, 1]} : vector<8x160xf32> to vector<8x128xf32>
    %24 = vector.extract_strided_slice %2 {offsets = [1, 0], sizes = [1, 128], strides = [1, 1]} : vector<8x128xf32> to vector<1x128xf32>
    %25 = vector.broadcast %24 : vector<1x128xf32> to vector<8x128xf32>
    %26 = arith.addf %23, %25 : vector<8x128xf32>
    %27 = vector.extract_strided_slice %22 {offsets = [0, 128], sizes = [8, 32], strides = [1, 1]} : vector<8x160xf32> to vector<8x32xf32>
    %28 = arith.truncf %27 : vector<8x32xf32> to vector<8x32xbf16>
    %c1_15 = arith.constant 1 : index
    %c0_16 = arith.constant 0 : index
    %c0_17 = arith.constant 0 : index
    %29 = vector.load %arg2[%c1_15, %c0_16, %c0_17] : memref<18x32x128xbf16, #tpu.memory_space<vmem>>, vector<1x32x128xbf16>
    %30 = vector.shape_cast %29 : vector<1x32x128xbf16> to vector<32x128xbf16>
    %cst_18 = arith.constant dense<0.000000e+00> : vector<8x128xf32>
    %31 = tpu.matmul %28, %30, %cst_18 {dimension_numbers = #tpu.dot_dimension_numbers<[1], [0], [0], [1], [0, 0, 1, 1], [], []>} : vector<8x32xbf16>, vector<32x128xbf16>, vector<8x128xf32> -> vector<8x128xf32>
    %32 = arith.addf %26, %31 : vector<8x128xf32>
    %cst_19 = arith.constant 0.000000e+00 : f32
    %33 = vector.broadcast %cst_19 : f32 to vector<8x128xf32>
    %34 = arith.maximumf %32, %33 : vector<8x128xf32>
    %35 = arith.truncf %34 : vector<8x128xf32> to vector<8x128xbf16>
    %c2 = arith.constant 2 : index
    %c0_20 = arith.constant 0 : index
    %c0_21 = arith.constant 0 : index
    %36 = vector.load %arg1[%c2, %c0_20, %c0_21] : memref<18x128x160xbf16, #tpu.memory_space<vmem>>, vector<1x128x160xbf16>
    %37 = vector.shape_cast %36 : vector<1x128x160xbf16> to vector<128x160xbf16>
    %cst_22 = arith.constant dense<0.000000e+00> : vector<8x160xf32>
    %38 = tpu.matmul %35, %37, %cst_22 {dimension_numbers = #tpu.dot_dimension_numbers<[1], [0], [0], [1], [0, 0, 1, 1], [], []>} : vector<8x128xbf16>, vector<128x160xbf16>, vector<8x160xf32> -> vector<8x160xf32>
    %39 = vector.extract_strided_slice %38 {offsets = [0, 0], sizes = [8, 128], strides = [1, 1]} : vector<8x160xf32> to vector<8x128xf32>
    %40 = vector.extract_strided_slice %2 {offsets = [2, 0], sizes = [1, 128], strides = [1, 1]} : vector<8x128xf32> to vector<1x128xf32>
    %41 = vector.broadcast %40 : vector<1x128xf32> to vector<8x128xf32>
    %42 = arith.addf %39, %41 : vector<8x128xf32>
    %43 = vector.extract_strided_slice %38 {offsets = [0, 128], sizes = [8, 32], strides = [1, 1]} : vector<8x160xf32> to vector<8x32xf32>
    %44 = arith.truncf %43 : vector<8x32xf32> to vector<8x32xbf16>
    %c2_23 = arith.constant 2 : index
    %c0_24 = arith.constant 0 : index
    %c0_25 = arith.constant 0 : index
    %45 = vector.load %arg2[%c2_23, %c0_24, %c0_25] : memref<18x32x128xbf16, #tpu.memory_space<vmem>>, vector<1x32x128xbf16>
    %46 = vector.shape_cast %45 : vector<1x32x128xbf16> to vector<32x128xbf16>
    %cst_26 = arith.constant dense<0.000000e+00> : vector<8x128xf32>
    %47 = tpu.matmul %44, %46, %cst_26 {dimension_numbers = #tpu.dot_dimension_numbers<[1], [0], [0], [1], [0, 0, 1, 1], [], []>} : vector<8x32xbf16>, vector<32x128xbf16>, vector<8x128xf32> -> vector<8x128xf32>
    %48 = arith.addf %42, %47 : vector<8x128xf32>
    %49 = arith.addf %48, %0 : vector<8x128xf32>
    %cst_27 = arith.constant dense<0.000000e+00> : vector<8xf32>
    %50 = vector.multi_reduction <add>, %49, %cst_27 [1] : vector<8x128xf32> to vector<8xf32>
    %51 = vector.shape_cast %50 : vector<8xf32> to vector<8x1xf32>
    %cst_28 = arith.constant 1.280000e+02 : f32
    %52 = vector.broadcast %cst_28 : f32 to vector<8x1xf32>
    %53 = arith.divf %51, %52 : vector<8x1xf32>
    %54 = vector.broadcast %53 : vector<8x1xf32> to vector<8x128xf32>
    %55 = arith.subf %49, %54 : vector<8x128xf32>
    %56 = arith.mulf %55, %55 : vector<8x128xf32>
    %cst_29 = arith.constant dense<0.000000e+00> : vector<8xf32>
    %57 = vector.multi_reduction <add>, %56, %cst_29 [1] : vector<8x128xf32> to vector<8xf32>
    %58 = vector.shape_cast %57 : vector<8xf32> to vector<8x1xf32>
    %cst_30 = arith.constant 1.280000e+02 : f32
    %59 = vector.broadcast %cst_30 : f32 to vector<8x1xf32>
    %60 = arith.divf %58, %59 : vector<8x1xf32>
    %61 = vector.broadcast %53 : vector<8x1xf32> to vector<8x128xf32>
    %62 = arith.subf %49, %61 : vector<8x128xf32>
    %cst_31 = arith.constant 9.99999974E-6 : f32
    %63 = vector.broadcast %cst_31 : f32 to vector<8x1xf32>
    %64 = arith.addf %60, %63 : vector<8x1xf32>
    %65 = math.rsqrt %64 : vector<8x1xf32>
    %66 = vector.broadcast %65 : vector<8x1xf32> to vector<8x128xf32>
    %67 = arith.mulf %62, %66 : vector<8x128xf32>
    %68 = vector.extract_strided_slice %2 {offsets = [3, 0], sizes = [1, 128], strides = [1, 1]} : vector<8x128xf32> to vector<1x128xf32>
    %69 = vector.broadcast %68 : vector<1x128xf32> to vector<8x128xf32>
    %70 = arith.mulf %67, %69 : vector<8x128xf32>
    %71 = vector.extract_strided_slice %2 {offsets = [4, 0], sizes = [1, 128], strides = [1, 1]} : vector<8x128xf32> to vector<1x128xf32>
    %72 = vector.broadcast %71 : vector<1x128xf32> to vector<8x128xf32>
    %73 = arith.addf %70, %72 : vector<8x128xf32>
    %c1_32 = arith.constant 1 : index
    %c0_33 = arith.constant 0 : index
    %c0_34 = arith.constant 0 : index
    %74 = vector.load %arg3[%c1_32, %c0_33, %c0_34] : memref<6x8x128xf32, #tpu.memory_space<vmem>>, vector<1x8x128xf32>
    %75 = vector.shape_cast %74 : vector<1x8x128xf32> to vector<8x128xf32>
    %76 = arith.truncf %73 : vector<8x128xf32> to vector<8x128xbf16>
    %c3 = arith.constant 3 : index
    %c0_35 = arith.constant 0 : index
    %c0_36 = arith.constant 0 : index
    %77 = vector.load %arg1[%c3, %c0_35, %c0_36] : memref<18x128x160xbf16, #tpu.memory_space<vmem>>, vector<1x128x160xbf16>
    %78 = vector.shape_cast %77 : vector<1x128x160xbf16> to vector<128x160xbf16>
    %cst_37 = arith.constant dense<0.000000e+00> : vector<8x160xf32>
    %79 = tpu.matmul %76, %78, %cst_37 {dimension_numbers = #tpu.dot_dimension_numbers<[1], [0], [0], [1], [0, 0, 1, 1], [], []>} : vector<8x128xbf16>, vector<128x160xbf16>, vector<8x160xf32> -> vector<8x160xf32>
    %80 = vector.extract_strided_slice %79 {offsets = [0, 0], sizes = [8, 128], strides = [1, 1]} : vector<8x160xf32> to vector<8x128xf32>
    %81 = vector.extract_strided_slice %75 {offsets = [0, 0], sizes = [1, 128], strides = [1, 1]} : vector<8x128xf32> to vector<1x128xf32>
    %82 = vector.broadcast %81 : vector<1x128xf32> to vector<8x128xf32>
    %83 = arith.addf %80, %82 : vector<8x128xf32>
    %84 = vector.extract_strided_slice %79 {offsets = [0, 128], sizes = [8, 32], strides = [1, 1]} : vector<8x160xf32> to vector<8x32xf32>
    %85 = arith.truncf %84 : vector<8x32xf32> to vector<8x32xbf16>
    %c3_38 = arith.constant 3 : index
    %c0_39 = arith.constant 0 : index
    %c0_40 = arith.constant 0 : index
    %86 = vector.load %arg2[%c3_38, %c0_39, %c0_40] : memref<18x32x128xbf16, #tpu.memory_space<vmem>>, vector<1x32x128xbf16>
    %87 = vector.shape_cast %86 : vector<1x32x128xbf16> to vector<32x128xbf16>
    %cst_41 = arith.constant dense<0.000000e+00> : vector<8x128xf32>
    %88 = tpu.matmul %85, %87, %cst_41 {dimension_numbers = #tpu.dot_dimension_numbers<[1], [0], [0], [1], [0, 0, 1, 1], [], []>} : vector<8x32xbf16>, vector<32x128xbf16>, vector<8x128xf32> -> vector<8x128xf32>
    %89 = arith.addf %83, %88 : vector<8x128xf32>
    %cst_42 = arith.constant 0.000000e+00 : f32
    %90 = vector.broadcast %cst_42 : f32 to vector<8x128xf32>
    %91 = arith.maximumf %89, %90 : vector<8x128xf32>
    %92 = arith.truncf %91 : vector<8x128xf32> to vector<8x128xbf16>
    %c4 = arith.constant 4 : index
    %c0_43 = arith.constant 0 : index
    %c0_44 = arith.constant 0 : index
    %93 = vector.load %arg1[%c4, %c0_43, %c0_44] : memref<18x128x160xbf16, #tpu.memory_space<vmem>>, vector<1x128x160xbf16>
    %94 = vector.shape_cast %93 : vector<1x128x160xbf16> to vector<128x160xbf16>
    %cst_45 = arith.constant dense<0.000000e+00> : vector<8x160xf32>
    %95 = tpu.matmul %92, %94, %cst_45 {dimension_numbers = #tpu.dot_dimension_numbers<[1], [0], [0], [1], [0, 0, 1, 1], [], []>} : vector<8x128xbf16>, vector<128x160xbf16>, vector<8x160xf32> -> vector<8x160xf32>
    %96 = vector.extract_strided_slice %95 {offsets = [0, 0], sizes = [8, 128], strides = [1, 1]} : vector<8x160xf32> to vector<8x128xf32>
    %97 = vector.extract_strided_slice %75 {offsets = [1, 0], sizes = [1, 128], strides = [1, 1]} : vector<8x128xf32> to vector<1x128xf32>
    %98 = vector.broadcast %97 : vector<1x128xf32> to vector<8x128xf32>
    %99 = arith.addf %96, %98 : vector<8x128xf32>
    %100 = vector.extract_strided_slice %95 {offsets = [0, 128], sizes = [8, 32], strides = [1, 1]} : vector<8x160xf32> to vector<8x32xf32>
    %101 = arith.truncf %100 : vector<8x32xf32> to vector<8x32xbf16>
    %c4_46 = arith.constant 4 : index
    %c0_47 = arith.constant 0 : index
    %c0_48 = arith.constant 0 : index
    %102 = vector.load %arg2[%c4_46, %c0_47, %c0_48] : memref<18x32x128xbf16, #tpu.memory_space<vmem>>, vector<1x32x128xbf16>
    %103 = vector.shape_cast %102 : vector<1x32x128xbf16> to vector<32x128xbf16>
    %cst_49 = arith.constant dense<0.000000e+00> : vector<8x128xf32>
    %104 = tpu.matmul %101, %103, %cst_49 {dimension_numbers = #tpu.dot_dimension_numbers<[1], [0], [0], [1], [0, 0, 1, 1], [], []>} : vector<8x32xbf16>, vector<32x128xbf16>, vector<8x128xf32> -> vector<8x128xf32>
    %105 = arith.addf %99, %104 : vector<8x128xf32>
    %cst_50 = arith.constant 0.000000e+00 : f32
    %106 = vector.broadcast %cst_50 : f32 to vector<8x128xf32>
    %107 = arith.maximumf %105, %106 : vector<8x128xf32>
    %108 = arith.truncf %107 : vector<8x128xf32> to vector<8x128xbf16>
    %c5 = arith.constant 5 : index
    %c0_51 = arith.constant 0 : index
    %c0_52 = arith.constant 0 : index
    %109 = vector.load %arg1[%c5, %c0_51, %c0_52] : memref<18x128x160xbf16, #tpu.memory_space<vmem>>, vector<1x128x160xbf16>
    %110 = vector.shape_cast %109 : vector<1x128x160xbf16> to vector<128x160xbf16>
    %cst_53 = arith.constant dense<0.000000e+00> : vector<8x160xf32>
    %111 = tpu.matmul %108, %110, %cst_53 {dimension_numbers = #tpu.dot_dimension_numbers<[1], [0], [0], [1], [0, 0, 1, 1], [], []>} : vector<8x128xbf16>, vector<128x160xbf16>, vector<8x160xf32> -> vector<8x160xf32>
    %112 = vector.extract_strided_slice %111 {offsets = [0, 0], sizes = [8, 128], strides = [1, 1]} : vector<8x160xf32> to vector<8x128xf32>
    %113 = vector.extract_strided_slice %75 {offsets = [2, 0], sizes = [1, 128], strides = [1, 1]} : vector<8x128xf32> to vector<1x128xf32>
    %114 = vector.broadcast %113 : vector<1x128xf32> to vector<8x128xf32>
    %115 = arith.addf %112, %114 : vector<8x128xf32>
    %116 = vector.extract_strided_slice %111 {offsets = [0, 128], sizes = [8, 32], strides = [1, 1]} : vector<8x160xf32> to vector<8x32xf32>
    %117 = arith.truncf %116 : vector<8x32xf32> to vector<8x32xbf16>
    %c5_54 = arith.constant 5 : index
    %c0_55 = arith.constant 0 : index
    %c0_56 = arith.constant 0 : index
    %118 = vector.load %arg2[%c5_54, %c0_55, %c0_56] : memref<18x32x128xbf16, #tpu.memory_space<vmem>>, vector<1x32x128xbf16>
    %119 = vector.shape_cast %118 : vector<1x32x128xbf16> to vector<32x128xbf16>
    %cst_57 = arith.constant dense<0.000000e+00> : vector<8x128xf32>
    %120 = tpu.matmul %117, %119, %cst_57 {dimension_numbers = #tpu.dot_dimension_numbers<[1], [0], [0], [1], [0, 0, 1, 1], [], []>} : vector<8x32xbf16>, vector<32x128xbf16>, vector<8x128xf32> -> vector<8x128xf32>
    %121 = arith.addf %115, %120 : vector<8x128xf32>
    %122 = arith.addf %121, %73 : vector<8x128xf32>
    %cst_58 = arith.constant dense<0.000000e+00> : vector<8xf32>
    %123 = vector.multi_reduction <add>, %122, %cst_58 [1] : vector<8x128xf32> to vector<8xf32>
    %124 = vector.shape_cast %123 : vector<8xf32> to vector<8x1xf32>
    %cst_59 = arith.constant 1.280000e+02 : f32
    %125 = vector.broadcast %cst_59 : f32 to vector<8x1xf32>
    %126 = arith.divf %124, %125 : vector<8x1xf32>
    %127 = vector.broadcast %126 : vector<8x1xf32> to vector<8x128xf32>
    %128 = arith.subf %122, %127 : vector<8x128xf32>
    %129 = arith.mulf %128, %128 : vector<8x128xf32>
    %cst_60 = arith.constant dense<0.000000e+00> : vector<8xf32>
    %130 = vector.multi_reduction <add>, %129, %cst_60 [1] : vector<8x128xf32> to vector<8xf32>
    %131 = vector.shape_cast %130 : vector<8xf32> to vector<8x1xf32>
    %cst_61 = arith.constant 1.280000e+02 : f32
    %132 = vector.broadcast %cst_61 : f32 to vector<8x1xf32>
    %133 = arith.divf %131, %132 : vector<8x1xf32>
    %134 = vector.broadcast %126 : vector<8x1xf32> to vector<8x128xf32>
    %135 = arith.subf %122, %134 : vector<8x128xf32>
    %cst_62 = arith.constant 9.99999974E-6 : f32
    %136 = vector.broadcast %cst_62 : f32 to vector<8x1xf32>
    %137 = arith.addf %133, %136 : vector<8x1xf32>
    %138 = math.rsqrt %137 : vector<8x1xf32>
    %139 = vector.broadcast %138 : vector<8x1xf32> to vector<8x128xf32>
    %140 = arith.mulf %135, %139 : vector<8x128xf32>
    %141 = vector.extract_strided_slice %75 {offsets = [3, 0], sizes = [1, 128], strides = [1, 1]} : vector<8x128xf32> to vector<1x128xf32>
    %142 = vector.broadcast %141 : vector<1x128xf32> to vector<8x128xf32>
    %143 = arith.mulf %140, %142 : vector<8x128xf32>
    %144 = vector.extract_strided_slice %75 {offsets = [4, 0], sizes = [1, 128], strides = [1, 1]} : vector<8x128xf32> to vector<1x128xf32>
    %145 = vector.broadcast %144 : vector<1x128xf32> to vector<8x128xf32>
    %146 = arith.addf %143, %145 : vector<8x128xf32>
    %c2_63 = arith.constant 2 : index
    %c0_64 = arith.constant 0 : index
    %c0_65 = arith.constant 0 : index
    %147 = vector.load %arg3[%c2_63, %c0_64, %c0_65] : memref<6x8x128xf32, #tpu.memory_space<vmem>>, vector<1x8x128xf32>
    %148 = vector.shape_cast %147 : vector<1x8x128xf32> to vector<8x128xf32>
    %149 = arith.truncf %146 : vector<8x128xf32> to vector<8x128xbf16>
    %c6 = arith.constant 6 : index
    %c0_66 = arith.constant 0 : index
    %c0_67 = arith.constant 0 : index
    %150 = vector.load %arg1[%c6, %c0_66, %c0_67] : memref<18x128x160xbf16, #tpu.memory_space<vmem>>, vector<1x128x160xbf16>
    %151 = vector.shape_cast %150 : vector<1x128x160xbf16> to vector<128x160xbf16>
    %cst_68 = arith.constant dense<0.000000e+00> : vector<8x160xf32>
    %152 = tpu.matmul %149, %151, %cst_68 {dimension_numbers = #tpu.dot_dimension_numbers<[1], [0], [0], [1], [0, 0, 1, 1], [], []>} : vector<8x128xbf16>, vector<128x160xbf16>, vector<8x160xf32> -> vector<8x160xf32>
    %153 = vector.extract_strided_slice %152 {offsets = [0, 0], sizes = [8, 128], strides = [1, 1]} : vector<8x160xf32> to vector<8x128xf32>
    %154 = vector.extract_strided_slice %148 {offsets = [0, 0], sizes = [1, 128], strides = [1, 1]} : vector<8x128xf32> to vector<1x128xf32>
    %155 = vector.broadcast %154 : vector<1x128xf32> to vector<8x128xf32>
    %156 = arith.addf %153, %155 : vector<8x128xf32>
    %157 = vector.extract_strided_slice %152 {offsets = [0, 128], sizes = [8, 32], strides = [1, 1]} : vector<8x160xf32> to vector<8x32xf32>
    %158 = arith.truncf %157 : vector<8x32xf32> to vector<8x32xbf16>
    %c6_69 = arith.constant 6 : index
    %c0_70 = arith.constant 0 : index
    %c0_71 = arith.constant 0 : index
    %159 = vector.load %arg2[%c6_69, %c0_70, %c0_71] : memref<18x32x128xbf16, #tpu.memory_space<vmem>>, vector<1x32x128xbf16>
    %160 = vector.shape_cast %159 : vector<1x32x128xbf16> to vector<32x128xbf16>
    %cst_72 = arith.constant dense<0.000000e+00> : vector<8x128xf32>
    %161 = tpu.matmul %158, %160, %cst_72 {dimension_numbers = #tpu.dot_dimension_numbers<[1], [0], [0], [1], [0, 0, 1, 1], [], []>} : vector<8x32xbf16>, vector<32x128xbf16>, vector<8x128xf32> -> vector<8x128xf32>
    %162 = arith.addf %156, %161 : vector<8x128xf32>
    %cst_73 = arith.constant 0.000000e+00 : f32
    %163 = vector.broadcast %cst_73 : f32 to vector<8x128xf32>
    %164 = arith.maximumf %162, %163 : vector<8x128xf32>
    %165 = arith.truncf %164 : vector<8x128xf32> to vector<8x128xbf16>
    %c7 = arith.constant 7 : index
    %c0_74 = arith.constant 0 : index
    %c0_75 = arith.constant 0 : index
    %166 = vector.load %arg1[%c7, %c0_74, %c0_75] : memref<18x128x160xbf16, #tpu.memory_space<vmem>>, vector<1x128x160xbf16>
    %167 = vector.shape_cast %166 : vector<1x128x160xbf16> to vector<128x160xbf16>
    %cst_76 = arith.constant dense<0.000000e+00> : vector<8x160xf32>
    %168 = tpu.matmul %165, %167, %cst_76 {dimension_numbers = #tpu.dot_dimension_numbers<[1], [0], [0], [1], [0, 0, 1, 1], [], []>} : vector<8x128xbf16>, vector<128x160xbf16>, vector<8x160xf32> -> vector<8x160xf32>
    %169 = vector.extract_strided_slice %168 {offsets = [0, 0], sizes = [8, 128], strides = [1, 1]} : vector<8x160xf32> to vector<8x128xf32>
    %170 = vector.extract_strided_slice %148 {offsets = [1, 0], sizes = [1, 128], strides = [1, 1]} : vector<8x128xf32> to vector<1x128xf32>
    %171 = vector.broadcast %170 : vector<1x128xf32> to vector<8x128xf32>
    %172 = arith.addf %169, %171 : vector<8x128xf32>
    %173 = vector.extract_strided_slice %168 {offsets = [0, 128], sizes = [8, 32], strides = [1, 1]} : vector<8x160xf32> to vector<8x32xf32>
    %174 = arith.truncf %173 : vector<8x32xf32> to vector<8x32xbf16>
    %c7_77 = arith.constant 7 : index
    %c0_78 = arith.constant 0 : index
    %c0_79 = arith.constant 0 : index
    %175 = vector.load %arg2[%c7_77, %c0_78, %c0_79] : memref<18x32x128xbf16, #tpu.memory_space<vmem>>, vector<1x32x128xbf16>
    %176 = vector.shape_cast %175 : vector<1x32x128xbf16> to vector<32x128xbf16>
    %cst_80 = arith.constant dense<0.000000e+00> : vector<8x128xf32>
    %177 = tpu.matmul %174, %176, %cst_80 {dimension_numbers = #tpu.dot_dimension_numbers<[1], [0], [0], [1], [0, 0, 1, 1], [], []>} : vector<8x32xbf16>, vector<32x128xbf16>, vector<8x128xf32> -> vector<8x128xf32>
    %178 = arith.addf %172, %177 : vector<8x128xf32>
    %cst_81 = arith.constant 0.000000e+00 : f32
    %179 = vector.broadcast %cst_81 : f32 to vector<8x128xf32>
    %180 = arith.maximumf %178, %179 : vector<8x128xf32>
    %181 = arith.truncf %180 : vector<8x128xf32> to vector<8x128xbf16>
    %c8 = arith.constant 8 : index
    %c0_82 = arith.constant 0 : index
    %c0_83 = arith.constant 0 : index
    %182 = vector.load %arg1[%c8, %c0_82, %c0_83] : memref<18x128x160xbf16, #tpu.memory_space<vmem>>, vector<1x128x160xbf16>
    %183 = vector.shape_cast %182 : vector<1x128x160xbf16> to vector<128x160xbf16>
    %cst_84 = arith.constant dense<0.000000e+00> : vector<8x160xf32>
    %184 = tpu.matmul %181, %183, %cst_84 {dimension_numbers = #tpu.dot_dimension_numbers<[1], [0], [0], [1], [0, 0, 1, 1], [], []>} : vector<8x128xbf16>, vector<128x160xbf16>, vector<8x160xf32> -> vector<8x160xf32>
    %185 = vector.extract_strided_slice %184 {offsets = [0, 0], sizes = [8, 128], strides = [1, 1]} : vector<8x160xf32> to vector<8x128xf32>
    %186 = vector.extract_strided_slice %148 {offsets = [2, 0], sizes = [1, 128], strides = [1, 1]} : vector<8x128xf32> to vector<1x128xf32>
    %187 = vector.broadcast %186 : vector<1x128xf32> to vector<8x128xf32>
    %188 = arith.addf %185, %187 : vector<8x128xf32>
    %189 = vector.extract_strided_slice %184 {offsets = [0, 128], sizes = [8, 32], strides = [1, 1]} : vector<8x160xf32> to vector<8x32xf32>
    %190 = arith.truncf %189 : vector<8x32xf32> to vector<8x32xbf16>
    %c8_85 = arith.constant 8 : index
    %c0_86 = arith.constant 0 : index
    %c0_87 = arith.constant 0 : index
    %191 = vector.load %arg2[%c8_85, %c0_86, %c0_87] : memref<18x32x128xbf16, #tpu.memory_space<vmem>>, vector<1x32x128xbf16>
    %192 = vector.shape_cast %191 : vector<1x32x128xbf16> to vector<32x128xbf16>
    %cst_88 = arith.constant dense<0.000000e+00> : vector<8x128xf32>
    %193 = tpu.matmul %190, %192, %cst_88 {dimension_numbers = #tpu.dot_dimension_numbers<[1], [0], [0], [1], [0, 0, 1, 1], [], []>} : vector<8x32xbf16>, vector<32x128xbf16>, vector<8x128xf32> -> vector<8x128xf32>
    %194 = arith.addf %188, %193 : vector<8x128xf32>
    %195 = arith.addf %194, %146 : vector<8x128xf32>
    %cst_89 = arith.constant dense<0.000000e+00> : vector<8xf32>
    %196 = vector.multi_reduction <add>, %195, %cst_89 [1] : vector<8x128xf32> to vector<8xf32>
    %197 = vector.shape_cast %196 : vector<8xf32> to vector<8x1xf32>
    %cst_90 = arith.constant 1.280000e+02 : f32
    %198 = vector.broadcast %cst_90 : f32 to vector<8x1xf32>
    %199 = arith.divf %197, %198 : vector<8x1xf32>
    %200 = vector.broadcast %199 : vector<8x1xf32> to vector<8x128xf32>
    %201 = arith.subf %195, %200 : vector<8x128xf32>
    %202 = arith.mulf %201, %201 : vector<8x128xf32>
    %cst_91 = arith.constant dense<0.000000e+00> : vector<8xf32>
    %203 = vector.multi_reduction <add>, %202, %cst_91 [1] : vector<8x128xf32> to vector<8xf32>
    %204 = vector.shape_cast %203 : vector<8xf32> to vector<8x1xf32>
    %cst_92 = arith.constant 1.280000e+02 : f32
    %205 = vector.broadcast %cst_92 : f32 to vector<8x1xf32>
    %206 = arith.divf %204, %205 : vector<8x1xf32>
    %207 = vector.broadcast %199 : vector<8x1xf32> to vector<8x128xf32>
    %208 = arith.subf %195, %207 : vector<8x128xf32>
    %cst_93 = arith.constant 9.99999974E-6 : f32
    %209 = vector.broadcast %cst_93 : f32 to vector<8x1xf32>
    %210 = arith.addf %206, %209 : vector<8x1xf32>
    %211 = math.rsqrt %210 : vector<8x1xf32>
    %212 = vector.broadcast %211 : vector<8x1xf32> to vector<8x128xf32>
    %213 = arith.mulf %208, %212 : vector<8x128xf32>
    %214 = vector.extract_strided_slice %148 {offsets = [3, 0], sizes = [1, 128], strides = [1, 1]} : vector<8x128xf32> to vector<1x128xf32>
    %215 = vector.broadcast %214 : vector<1x128xf32> to vector<8x128xf32>
    %216 = arith.mulf %213, %215 : vector<8x128xf32>
    %217 = vector.extract_strided_slice %148 {offsets = [4, 0], sizes = [1, 128], strides = [1, 1]} : vector<8x128xf32> to vector<1x128xf32>
    %218 = vector.broadcast %217 : vector<1x128xf32> to vector<8x128xf32>
    %219 = arith.addf %216, %218 : vector<8x128xf32>
    %c3_94 = arith.constant 3 : index
    %c0_95 = arith.constant 0 : index
    %c0_96 = arith.constant 0 : index
    %220 = vector.load %arg3[%c3_94, %c0_95, %c0_96] : memref<6x8x128xf32, #tpu.memory_space<vmem>>, vector<1x8x128xf32>
    %221 = vector.shape_cast %220 : vector<1x8x128xf32> to vector<8x128xf32>
    %222 = arith.truncf %219 : vector<8x128xf32> to vector<8x128xbf16>
    %c9 = arith.constant 9 : index
    %c0_97 = arith.constant 0 : index
    %c0_98 = arith.constant 0 : index
    %223 = vector.load %arg1[%c9, %c0_97, %c0_98] : memref<18x128x160xbf16, #tpu.memory_space<vmem>>, vector<1x128x160xbf16>
    %224 = vector.shape_cast %223 : vector<1x128x160xbf16> to vector<128x160xbf16>
    %cst_99 = arith.constant dense<0.000000e+00> : vector<8x160xf32>
    %225 = tpu.matmul %222, %224, %cst_99 {dimension_numbers = #tpu.dot_dimension_numbers<[1], [0], [0], [1], [0, 0, 1, 1], [], []>} : vector<8x128xbf16>, vector<128x160xbf16>, vector<8x160xf32> -> vector<8x160xf32>
    %226 = vector.extract_strided_slice %225 {offsets = [0, 0], sizes = [8, 128], strides = [1, 1]} : vector<8x160xf32> to vector<8x128xf32>
    %227 = vector.extract_strided_slice %221 {offsets = [0, 0], sizes = [1, 128], strides = [1, 1]} : vector<8x128xf32> to vector<1x128xf32>
    %228 = vector.broadcast %227 : vector<1x128xf32> to vector<8x128xf32>
    %229 = arith.addf %226, %228 : vector<8x128xf32>
    %230 = vector.extract_strided_slice %225 {offsets = [0, 128], sizes = [8, 32], strides = [1, 1]} : vector<8x160xf32> to vector<8x32xf32>
    %231 = arith.truncf %230 : vector<8x32xf32> to vector<8x32xbf16>
    %c9_100 = arith.constant 9 : index
    %c0_101 = arith.constant 0 : index
    %c0_102 = arith.constant 0 : index
    %232 = vector.load %arg2[%c9_100, %c0_101, %c0_102] : memref<18x32x128xbf16, #tpu.memory_space<vmem>>, vector<1x32x128xbf16>
    %233 = vector.shape_cast %232 : vector<1x32x128xbf16> to vector<32x128xbf16>
    %cst_103 = arith.constant dense<0.000000e+00> : vector<8x128xf32>
    %234 = tpu.matmul %231, %233, %cst_103 {dimension_numbers = #tpu.dot_dimension_numbers<[1], [0], [0], [1], [0, 0, 1, 1], [], []>} : vector<8x32xbf16>, vector<32x128xbf16>, vector<8x128xf32> -> vector<8x128xf32>
    %235 = arith.addf %229, %234 : vector<8x128xf32>
    %cst_104 = arith.constant 0.000000e+00 : f32
    %236 = vector.broadcast %cst_104 : f32 to vector<8x128xf32>
    %237 = arith.maximumf %235, %236 : vector<8x128xf32>
    %238 = arith.truncf %237 : vector<8x128xf32> to vector<8x128xbf16>
    %c10 = arith.constant 10 : index
    %c0_105 = arith.constant 0 : index
    %c0_106 = arith.constant 0 : index
    %239 = vector.load %arg1[%c10, %c0_105, %c0_106] : memref<18x128x160xbf16, #tpu.memory_space<vmem>>, vector<1x128x160xbf16>
    %240 = vector.shape_cast %239 : vector<1x128x160xbf16> to vector<128x160xbf16>
    %cst_107 = arith.constant dense<0.000000e+00> : vector<8x160xf32>
    %241 = tpu.matmul %238, %240, %cst_107 {dimension_numbers = #tpu.dot_dimension_numbers<[1], [0], [0], [1], [0, 0, 1, 1], [], []>} : vector<8x128xbf16>, vector<128x160xbf16>, vector<8x160xf32> -> vector<8x160xf32>
    %242 = vector.extract_strided_slice %241 {offsets = [0, 0], sizes = [8, 128], strides = [1, 1]} : vector<8x160xf32> to vector<8x128xf32>
    %243 = vector.extract_strided_slice %221 {offsets = [1, 0], sizes = [1, 128], strides = [1, 1]} : vector<8x128xf32> to vector<1x128xf32>
    %244 = vector.broadcast %243 : vector<1x128xf32> to vector<8x128xf32>
    %245 = arith.addf %242, %244 : vector<8x128xf32>
    %246 = vector.extract_strided_slice %241 {offsets = [0, 128], sizes = [8, 32], strides = [1, 1]} : vector<8x160xf32> to vector<8x32xf32>
    %247 = arith.truncf %246 : vector<8x32xf32> to vector<8x32xbf16>
    %c10_108 = arith.constant 10 : index
    %c0_109 = arith.constant 0 : index
    %c0_110 = arith.constant 0 : index
    %248 = vector.load %arg2[%c10_108, %c0_109, %c0_110] : memref<18x32x128xbf16, #tpu.memory_space<vmem>>, vector<1x32x128xbf16>
    %249 = vector.shape_cast %248 : vector<1x32x128xbf16> to vector<32x128xbf16>
    %cst_111 = arith.constant dense<0.000000e+00> : vector<8x128xf32>
    %250 = tpu.matmul %247, %249, %cst_111 {dimension_numbers = #tpu.dot_dimension_numbers<[1], [0], [0], [1], [0, 0, 1, 1], [], []>} : vector<8x32xbf16>, vector<32x128xbf16>, vector<8x128xf32> -> vector<8x128xf32>
    %251 = arith.addf %245, %250 : vector<8x128xf32>
    %cst_112 = arith.constant 0.000000e+00 : f32
    %252 = vector.broadcast %cst_112 : f32 to vector<8x128xf32>
    %253 = arith.maximumf %251, %252 : vector<8x128xf32>
    %254 = arith.truncf %253 : vector<8x128xf32> to vector<8x128xbf16>
    %c11 = arith.constant 11 : index
    %c0_113 = arith.constant 0 : index
    %c0_114 = arith.constant 0 : index
    %255 = vector.load %arg1[%c11, %c0_113, %c0_114] : memref<18x128x160xbf16, #tpu.memory_space<vmem>>, vector<1x128x160xbf16>
    %256 = vector.shape_cast %255 : vector<1x128x160xbf16> to vector<128x160xbf16>
    %cst_115 = arith.constant dense<0.000000e+00> : vector<8x160xf32>
    %257 = tpu.matmul %254, %256, %cst_115 {dimension_numbers = #tpu.dot_dimension_numbers<[1], [0], [0], [1], [0, 0, 1, 1], [], []>} : vector<8x128xbf16>, vector<128x160xbf16>, vector<8x160xf32> -> vector<8x160xf32>
    %258 = vector.extract_strided_slice %257 {offsets = [0, 0], sizes = [8, 128], strides = [1, 1]} : vector<8x160xf32> to vector<8x128xf32>
    %259 = vector.extract_strided_slice %221 {offsets = [2, 0], sizes = [1, 128], strides = [1, 1]} : vector<8x128xf32> to vector<1x128xf32>
    %260 = vector.broadcast %259 : vector<1x128xf32> to vector<8x128xf32>
    %261 = arith.addf %258, %260 : vector<8x128xf32>
    %262 = vector.extract_strided_slice %257 {offsets = [0, 128], sizes = [8, 32], strides = [1, 1]} : vector<8x160xf32> to vector<8x32xf32>
    %263 = arith.truncf %262 : vector<8x32xf32> to vector<8x32xbf16>
    %c11_116 = arith.constant 11 : index
    %c0_117 = arith.constant 0 : index
    %c0_118 = arith.constant 0 : index
    %264 = vector.load %arg2[%c11_116, %c0_117, %c0_118] : memref<18x32x128xbf16, #tpu.memory_space<vmem>>, vector<1x32x128xbf16>
    %265 = vector.shape_cast %264 : vector<1x32x128xbf16> to vector<32x128xbf16>
    %cst_119 = arith.constant dense<0.000000e+00> : vector<8x128xf32>
    %266 = tpu.matmul %263, %265, %cst_119 {dimension_numbers = #tpu.dot_dimension_numbers<[1], [0], [0], [1], [0, 0, 1, 1], [], []>} : vector<8x32xbf16>, vector<32x128xbf16>, vector<8x128xf32> -> vector<8x128xf32>
    %267 = arith.addf %261, %266 : vector<8x128xf32>
    %268 = arith.addf %267, %219 : vector<8x128xf32>
    %cst_120 = arith.constant dense<0.000000e+00> : vector<8xf32>
    %269 = vector.multi_reduction <add>, %268, %cst_120 [1] : vector<8x128xf32> to vector<8xf32>
    %270 = vector.shape_cast %269 : vector<8xf32> to vector<8x1xf32>
    %cst_121 = arith.constant 1.280000e+02 : f32
    %271 = vector.broadcast %cst_121 : f32 to vector<8x1xf32>
    %272 = arith.divf %270, %271 : vector<8x1xf32>
    %273 = vector.broadcast %272 : vector<8x1xf32> to vector<8x128xf32>
    %274 = arith.subf %268, %273 : vector<8x128xf32>
    %275 = arith.mulf %274, %274 : vector<8x128xf32>
    %cst_122 = arith.constant dense<0.000000e+00> : vector<8xf32>
    %276 = vector.multi_reduction <add>, %275, %cst_122 [1] : vector<8x128xf32> to vector<8xf32>
    %277 = vector.shape_cast %276 : vector<8xf32> to vector<8x1xf32>
    %cst_123 = arith.constant 1.280000e+02 : f32
    %278 = vector.broadcast %cst_123 : f32 to vector<8x1xf32>
    %279 = arith.divf %277, %278 : vector<8x1xf32>
    %280 = vector.broadcast %272 : vector<8x1xf32> to vector<8x128xf32>
    %281 = arith.subf %268, %280 : vector<8x128xf32>
    %cst_124 = arith.constant 9.99999974E-6 : f32
    %282 = vector.broadcast %cst_124 : f32 to vector<8x1xf32>
    %283 = arith.addf %279, %282 : vector<8x1xf32>
    %284 = math.rsqrt %283 : vector<8x1xf32>
    %285 = vector.broadcast %284 : vector<8x1xf32> to vector<8x128xf32>
    %286 = arith.mulf %281, %285 : vector<8x128xf32>
    %287 = vector.extract_strided_slice %221 {offsets = [3, 0], sizes = [1, 128], strides = [1, 1]} : vector<8x128xf32> to vector<1x128xf32>
    %288 = vector.broadcast %287 : vector<1x128xf32> to vector<8x128xf32>
    %289 = arith.mulf %286, %288 : vector<8x128xf32>
    %290 = vector.extract_strided_slice %221 {offsets = [4, 0], sizes = [1, 128], strides = [1, 1]} : vector<8x128xf32> to vector<1x128xf32>
    %291 = vector.broadcast %290 : vector<1x128xf32> to vector<8x128xf32>
    %292 = arith.addf %289, %291 : vector<8x128xf32>
    %c4_125 = arith.constant 4 : index
    %c0_126 = arith.constant 0 : index
    %c0_127 = arith.constant 0 : index
    %293 = vector.load %arg3[%c4_125, %c0_126, %c0_127] : memref<6x8x128xf32, #tpu.memory_space<vmem>>, vector<1x8x128xf32>
    %294 = vector.shape_cast %293 : vector<1x8x128xf32> to vector<8x128xf32>
    %295 = arith.truncf %292 : vector<8x128xf32> to vector<8x128xbf16>
    %c12 = arith.constant 12 : index
    %c0_128 = arith.constant 0 : index
    %c0_129 = arith.constant 0 : index
    %296 = vector.load %arg1[%c12, %c0_128, %c0_129] : memref<18x128x160xbf16, #tpu.memory_space<vmem>>, vector<1x128x160xbf16>
    %297 = vector.shape_cast %296 : vector<1x128x160xbf16> to vector<128x160xbf16>
    %cst_130 = arith.constant dense<0.000000e+00> : vector<8x160xf32>
    %298 = tpu.matmul %295, %297, %cst_130 {dimension_numbers = #tpu.dot_dimension_numbers<[1], [0], [0], [1], [0, 0, 1, 1], [], []>} : vector<8x128xbf16>, vector<128x160xbf16>, vector<8x160xf32> -> vector<8x160xf32>
    %299 = vector.extract_strided_slice %298 {offsets = [0, 0], sizes = [8, 128], strides = [1, 1]} : vector<8x160xf32> to vector<8x128xf32>
    %300 = vector.extract_strided_slice %294 {offsets = [0, 0], sizes = [1, 128], strides = [1, 1]} : vector<8x128xf32> to vector<1x128xf32>
    %301 = vector.broadcast %300 : vector<1x128xf32> to vector<8x128xf32>
    %302 = arith.addf %299, %301 : vector<8x128xf32>
    %303 = vector.extract_strided_slice %298 {offsets = [0, 128], sizes = [8, 32], strides = [1, 1]} : vector<8x160xf32> to vector<8x32xf32>
    %304 = arith.truncf %303 : vector<8x32xf32> to vector<8x32xbf16>
    %c12_131 = arith.constant 12 : index
    %c0_132 = arith.constant 0 : index
    %c0_133 = arith.constant 0 : index
    %305 = vector.load %arg2[%c12_131, %c0_132, %c0_133] : memref<18x32x128xbf16, #tpu.memory_space<vmem>>, vector<1x32x128xbf16>
    %306 = vector.shape_cast %305 : vector<1x32x128xbf16> to vector<32x128xbf16>
    %cst_134 = arith.constant dense<0.000000e+00> : vector<8x128xf32>
    %307 = tpu.matmul %304, %306, %cst_134 {dimension_numbers = #tpu.dot_dimension_numbers<[1], [0], [0], [1], [0, 0, 1, 1], [], []>} : vector<8x32xbf16>, vector<32x128xbf16>, vector<8x128xf32> -> vector<8x128xf32>
    %308 = arith.addf %302, %307 : vector<8x128xf32>
    %cst_135 = arith.constant 0.000000e+00 : f32
    %309 = vector.broadcast %cst_135 : f32 to vector<8x128xf32>
    %310 = arith.maximumf %308, %309 : vector<8x128xf32>
    %311 = arith.truncf %310 : vector<8x128xf32> to vector<8x128xbf16>
    %c13 = arith.constant 13 : index
    %c0_136 = arith.constant 0 : index
    %c0_137 = arith.constant 0 : index
    %312 = vector.load %arg1[%c13, %c0_136, %c0_137] : memref<18x128x160xbf16, #tpu.memory_space<vmem>>, vector<1x128x160xbf16>
    %313 = vector.shape_cast %312 : vector<1x128x160xbf16> to vector<128x160xbf16>
    %cst_138 = arith.constant dense<0.000000e+00> : vector<8x160xf32>
    %314 = tpu.matmul %311, %313, %cst_138 {dimension_numbers = #tpu.dot_dimension_numbers<[1], [0], [0], [1], [0, 0, 1, 1], [], []>} : vector<8x128xbf16>, vector<128x160xbf16>, vector<8x160xf32> -> vector<8x160xf32>
    %315 = vector.extract_strided_slice %314 {offsets = [0, 0], sizes = [8, 128], strides = [1, 1]} : vector<8x160xf32> to vector<8x128xf32>
    %316 = vector.extract_strided_slice %294 {offsets = [1, 0], sizes = [1, 128], strides = [1, 1]} : vector<8x128xf32> to vector<1x128xf32>
    %317 = vector.broadcast %316 : vector<1x128xf32> to vector<8x128xf32>
    %318 = arith.addf %315, %317 : vector<8x128xf32>
    %319 = vector.extract_strided_slice %314 {offsets = [0, 128], sizes = [8, 32], strides = [1, 1]} : vector<8x160xf32> to vector<8x32xf32>
    %320 = arith.truncf %319 : vector<8x32xf32> to vector<8x32xbf16>
    %c13_139 = arith.constant 13 : index
    %c0_140 = arith.constant 0 : index
    %c0_141 = arith.constant 0 : index
    %321 = vector.load %arg2[%c13_139, %c0_140, %c0_141] : memref<18x32x128xbf16, #tpu.memory_space<vmem>>, vector<1x32x128xbf16>
    %322 = vector.shape_cast %321 : vector<1x32x128xbf16> to vector<32x128xbf16>
    %cst_142 = arith.constant dense<0.000000e+00> : vector<8x128xf32>
    %323 = tpu.matmul %320, %322, %cst_142 {dimension_numbers = #tpu.dot_dimension_numbers<[1], [0], [0], [1], [0, 0, 1, 1], [], []>} : vector<8x32xbf16>, vector<32x128xbf16>, vector<8x128xf32> -> vector<8x128xf32>
    %324 = arith.addf %318, %323 : vector<8x128xf32>
    %cst_143 = arith.constant 0.000000e+00 : f32
    %325 = vector.broadcast %cst_143 : f32 to vector<8x128xf32>
    %326 = arith.maximumf %324, %325 : vector<8x128xf32>
    %327 = arith.truncf %326 : vector<8x128xf32> to vector<8x128xbf16>
    %c14 = arith.constant 14 : index
    %c0_144 = arith.constant 0 : index
    %c0_145 = arith.constant 0 : index
    %328 = vector.load %arg1[%c14, %c0_144, %c0_145] : memref<18x128x160xbf16, #tpu.memory_space<vmem>>, vector<1x128x160xbf16>
    %329 = vector.shape_cast %328 : vector<1x128x160xbf16> to vector<128x160xbf16>
    %cst_146 = arith.constant dense<0.000000e+00> : vector<8x160xf32>
    %330 = tpu.matmul %327, %329, %cst_146 {dimension_numbers = #tpu.dot_dimension_numbers<[1], [0], [0], [1], [0, 0, 1, 1], [], []>} : vector<8x128xbf16>, vector<128x160xbf16>, vector<8x160xf32> -> vector<8x160xf32>
    %331 = vector.extract_strided_slice %330 {offsets = [0, 0], sizes = [8, 128], strides = [1, 1]} : vector<8x160xf32> to vector<8x128xf32>
    %332 = vector.extract_strided_slice %294 {offsets = [2, 0], sizes = [1, 128], strides = [1, 1]} : vector<8x128xf32> to vector<1x128xf32>
    %333 = vector.broadcast %332 : vector<1x128xf32> to vector<8x128xf32>
    %334 = arith.addf %331, %333 : vector<8x128xf32>
    %335 = vector.extract_strided_slice %330 {offsets = [0, 128], sizes = [8, 32], strides = [1, 1]} : vector<8x160xf32> to vector<8x32xf32>
    %336 = arith.truncf %335 : vector<8x32xf32> to vector<8x32xbf16>
    %c14_147 = arith.constant 14 : index
    %c0_148 = arith.constant 0 : index
    %c0_149 = arith.constant 0 : index
    %337 = vector.load %arg2[%c14_147, %c0_148, %c0_149] : memref<18x32x128xbf16, #tpu.memory_space<vmem>>, vector<1x32x128xbf16>
    %338 = vector.shape_cast %337 : vector<1x32x128xbf16> to vector<32x128xbf16>
    %cst_150 = arith.constant dense<0.000000e+00> : vector<8x128xf32>
    %339 = tpu.matmul %336, %338, %cst_150 {dimension_numbers = #tpu.dot_dimension_numbers<[1], [0], [0], [1], [0, 0, 1, 1], [], []>} : vector<8x32xbf16>, vector<32x128xbf16>, vector<8x128xf32> -> vector<8x128xf32>
    %340 = arith.addf %334, %339 : vector<8x128xf32>
    %341 = arith.addf %340, %292 : vector<8x128xf32>
    %cst_151 = arith.constant dense<0.000000e+00> : vector<8xf32>
    %342 = vector.multi_reduction <add>, %341, %cst_151 [1] : vector<8x128xf32> to vector<8xf32>
    %343 = vector.shape_cast %342 : vector<8xf32> to vector<8x1xf32>
    %cst_152 = arith.constant 1.280000e+02 : f32
    %344 = vector.broadcast %cst_152 : f32 to vector<8x1xf32>
    %345 = arith.divf %343, %344 : vector<8x1xf32>
    %346 = vector.broadcast %345 : vector<8x1xf32> to vector<8x128xf32>
    %347 = arith.subf %341, %346 : vector<8x128xf32>
    %348 = arith.mulf %347, %347 : vector<8x128xf32>
    %cst_153 = arith.constant dense<0.000000e+00> : vector<8xf32>
    %349 = vector.multi_reduction <add>, %348, %cst_153 [1] : vector<8x128xf32> to vector<8xf32>
    %350 = vector.shape_cast %349 : vector<8xf32> to vector<8x1xf32>
    %cst_154 = arith.constant 1.280000e+02 : f32
    %351 = vector.broadcast %cst_154 : f32 to vector<8x1xf32>
    %352 = arith.divf %350, %351 : vector<8x1xf32>
    %353 = vector.broadcast %345 : vector<8x1xf32> to vector<8x128xf32>
    %354 = arith.subf %341, %353 : vector<8x128xf32>
    %cst_155 = arith.constant 9.99999974E-6 : f32
    %355 = vector.broadcast %cst_155 : f32 to vector<8x1xf32>
    %356 = arith.addf %352, %355 : vector<8x1xf32>
    %357 = math.rsqrt %356 : vector<8x1xf32>
    %358 = vector.broadcast %357 : vector<8x1xf32> to vector<8x128xf32>
    %359 = arith.mulf %354, %358 : vector<8x128xf32>
    %360 = vector.extract_strided_slice %294 {offsets = [3, 0], sizes = [1, 128], strides = [1, 1]} : vector<8x128xf32> to vector<1x128xf32>
    %361 = vector.broadcast %360 : vector<1x128xf32> to vector<8x128xf32>
    %362 = arith.mulf %359, %361 : vector<8x128xf32>
    %363 = vector.extract_strided_slice %294 {offsets = [4, 0], sizes = [1, 128], strides = [1, 1]} : vector<8x128xf32> to vector<1x128xf32>
    %364 = vector.broadcast %363 : vector<1x128xf32> to vector<8x128xf32>
    %365 = arith.addf %362, %364 : vector<8x128xf32>
    %c5_156 = arith.constant 5 : index
    %c0_157 = arith.constant 0 : index
    %c0_158 = arith.constant 0 : index
    %366 = vector.load %arg3[%c5_156, %c0_157, %c0_158] : memref<6x8x128xf32, #tpu.memory_space<vmem>>, vector<1x8x128xf32>
    %367 = vector.shape_cast %366 : vector<1x8x128xf32> to vector<8x128xf32>
    %368 = arith.truncf %365 : vector<8x128xf32> to vector<8x128xbf16>
    %c15 = arith.constant 15 : index
    %c0_159 = arith.constant 0 : index
    %c0_160 = arith.constant 0 : index
    %369 = vector.load %arg1[%c15, %c0_159, %c0_160] : memref<18x128x160xbf16, #tpu.memory_space<vmem>>, vector<1x128x160xbf16>
    %370 = vector.shape_cast %369 : vector<1x128x160xbf16> to vector<128x160xbf16>
    %cst_161 = arith.constant dense<0.000000e+00> : vector<8x160xf32>
    %371 = tpu.matmul %368, %370, %cst_161 {dimension_numbers = #tpu.dot_dimension_numbers<[1], [0], [0], [1], [0, 0, 1, 1], [], []>} : vector<8x128xbf16>, vector<128x160xbf16>, vector<8x160xf32> -> vector<8x160xf32>
    %372 = vector.extract_strided_slice %371 {offsets = [0, 0], sizes = [8, 128], strides = [1, 1]} : vector<8x160xf32> to vector<8x128xf32>
    %373 = vector.extract_strided_slice %367 {offsets = [0, 0], sizes = [1, 128], strides = [1, 1]} : vector<8x128xf32> to vector<1x128xf32>
    %374 = vector.broadcast %373 : vector<1x128xf32> to vector<8x128xf32>
    %375 = arith.addf %372, %374 : vector<8x128xf32>
    %376 = vector.extract_strided_slice %371 {offsets = [0, 128], sizes = [8, 32], strides = [1, 1]} : vector<8x160xf32> to vector<8x32xf32>
    %377 = arith.truncf %376 : vector<8x32xf32> to vector<8x32xbf16>
    %c15_162 = arith.constant 15 : index
    %c0_163 = arith.constant 0 : index
    %c0_164 = arith.constant 0 : index
    %378 = vector.load %arg2[%c15_162, %c0_163, %c0_164] : memref<18x32x128xbf16, #tpu.memory_space<vmem>>, vector<1x32x128xbf16>
    %379 = vector.shape_cast %378 : vector<1x32x128xbf16> to vector<32x128xbf16>
    %cst_165 = arith.constant dense<0.000000e+00> : vector<8x128xf32>
    %380 = tpu.matmul %377, %379, %cst_165 {dimension_numbers = #tpu.dot_dimension_numbers<[1], [0], [0], [1], [0, 0, 1, 1], [], []>} : vector<8x32xbf16>, vector<32x128xbf16>, vector<8x128xf32> -> vector<8x128xf32>
    %381 = arith.addf %375, %380 : vector<8x128xf32>
    %cst_166 = arith.constant 0.000000e+00 : f32
    %382 = vector.broadcast %cst_166 : f32 to vector<8x128xf32>
    %383 = arith.maximumf %381, %382 : vector<8x128xf32>
    %384 = arith.truncf %383 : vector<8x128xf32> to vector<8x128xbf16>
    %c16 = arith.constant 16 : index
    %c0_167 = arith.constant 0 : index
    %c0_168 = arith.constant 0 : index
    %385 = vector.load %arg1[%c16, %c0_167, %c0_168] : memref<18x128x160xbf16, #tpu.memory_space<vmem>>, vector<1x128x160xbf16>
    %386 = vector.shape_cast %385 : vector<1x128x160xbf16> to vector<128x160xbf16>
    %cst_169 = arith.constant dense<0.000000e+00> : vector<8x160xf32>
    %387 = tpu.matmul %384, %386, %cst_169 {dimension_numbers = #tpu.dot_dimension_numbers<[1], [0], [0], [1], [0, 0, 1, 1], [], []>} : vector<8x128xbf16>, vector<128x160xbf16>, vector<8x160xf32> -> vector<8x160xf32>
    %388 = vector.extract_strided_slice %387 {offsets = [0, 0], sizes = [8, 128], strides = [1, 1]} : vector<8x160xf32> to vector<8x128xf32>
    %389 = vector.extract_strided_slice %367 {offsets = [1, 0], sizes = [1, 128], strides = [1, 1]} : vector<8x128xf32> to vector<1x128xf32>
    %390 = vector.broadcast %389 : vector<1x128xf32> to vector<8x128xf32>
    %391 = arith.addf %388, %390 : vector<8x128xf32>
    %392 = vector.extract_strided_slice %387 {offsets = [0, 128], sizes = [8, 32], strides = [1, 1]} : vector<8x160xf32> to vector<8x32xf32>
    %393 = arith.truncf %392 : vector<8x32xf32> to vector<8x32xbf16>
    %c16_170 = arith.constant 16 : index
    %c0_171 = arith.constant 0 : index
    %c0_172 = arith.constant 0 : index
    %394 = vector.load %arg2[%c16_170, %c0_171, %c0_172] : memref<18x32x128xbf16, #tpu.memory_space<vmem>>, vector<1x32x128xbf16>
    %395 = vector.shape_cast %394 : vector<1x32x128xbf16> to vector<32x128xbf16>
    %cst_173 = arith.constant dense<0.000000e+00> : vector<8x128xf32>
    %396 = tpu.matmul %393, %395, %cst_173 {dimension_numbers = #tpu.dot_dimension_numbers<[1], [0], [0], [1], [0, 0, 1, 1], [], []>} : vector<8x32xbf16>, vector<32x128xbf16>, vector<8x128xf32> -> vector<8x128xf32>
    %397 = arith.addf %391, %396 : vector<8x128xf32>
    %cst_174 = arith.constant 0.000000e+00 : f32
    %398 = vector.broadcast %cst_174 : f32 to vector<8x128xf32>
    %399 = arith.maximumf %397, %398 : vector<8x128xf32>
    %400 = arith.truncf %399 : vector<8x128xf32> to vector<8x128xbf16>
    %c17 = arith.constant 17 : index
    %c0_175 = arith.constant 0 : index
    %c0_176 = arith.constant 0 : index
    %401 = vector.load %arg1[%c17, %c0_175, %c0_176] : memref<18x128x160xbf16, #tpu.memory_space<vmem>>, vector<1x128x160xbf16>
    %402 = vector.shape_cast %401 : vector<1x128x160xbf16> to vector<128x160xbf16>
    %cst_177 = arith.constant dense<0.000000e+00> : vector<8x160xf32>
    %403 = tpu.matmul %400, %402, %cst_177 {dimension_numbers = #tpu.dot_dimension_numbers<[1], [0], [0], [1], [0, 0, 1, 1], [], []>} : vector<8x128xbf16>, vector<128x160xbf16>, vector<8x160xf32> -> vector<8x160xf32>
    %404 = vector.extract_strided_slice %403 {offsets = [0, 0], sizes = [8, 128], strides = [1, 1]} : vector<8x160xf32> to vector<8x128xf32>
    %405 = vector.extract_strided_slice %367 {offsets = [2, 0], sizes = [1, 128], strides = [1, 1]} : vector<8x128xf32> to vector<1x128xf32>
    %406 = vector.broadcast %405 : vector<1x128xf32> to vector<8x128xf32>
    %407 = arith.addf %404, %406 : vector<8x128xf32>
    %408 = vector.extract_strided_slice %403 {offsets = [0, 128], sizes = [8, 32], strides = [1, 1]} : vector<8x160xf32> to vector<8x32xf32>
    %409 = arith.truncf %408 : vector<8x32xf32> to vector<8x32xbf16>
    %c17_178 = arith.constant 17 : index
    %c0_179 = arith.constant 0 : index
    %c0_180 = arith.constant 0 : index
    %410 = vector.load %arg2[%c17_178, %c0_179, %c0_180] : memref<18x32x128xbf16, #tpu.memory_space<vmem>>, vector<1x32x128xbf16>
    %411 = vector.shape_cast %410 : vector<1x32x128xbf16> to vector<32x128xbf16>
    %cst_181 = arith.constant dense<0.000000e+00> : vector<8x128xf32>
    %412 = tpu.matmul %409, %411, %cst_181 {dimension_numbers = #tpu.dot_dimension_numbers<[1], [0], [0], [1], [0, 0, 1, 1], [], []>} : vector<8x32xbf16>, vector<32x128xbf16>, vector<8x128xf32> -> vector<8x128xf32>
    %413 = arith.addf %407, %412 : vector<8x128xf32>
    %414 = arith.addf %413, %365 : vector<8x128xf32>
    %c0_182 = arith.constant 0 : index
    %c0_183 = arith.constant 0 : index
    %415 = vector.load %arg4[%c0_182, %c0_183] : memref<8x128xf32, #tpu.memory_space<vmem>>, vector<8x128xf32>
    tpu.vector_store %arg4[%c0_182, %c0_183], %414 {strides = array<i32>} : memref<8x128xf32, #tpu.memory_space<vmem>>, vector<8x128xf32>,
    return
  }
}

</mosaic_0001>

<bundles_post_ra>
// kernel: tpu_custom_call.1
= control target key start
LH: loop header
LB: loop body
LE: loop exit
PB: predicated region body
PF: predicated region fallthrough
CT: control target
= control target key end

     0   :  { %v5266_v2 = vmov 0   ;;  %v5267_v3 = vmov 0.0   ;;  %vm5268_vm0 = vmmov 0   ;;  %s6514_s0 = inlined_call_operand.vmem [shape: f32[8,128], index: 0, kind: input, shape index: {}]   ;;  %s6515_s1 = inlined_call_operand.vmem [shape: bf16[18,128,160], index: 1, kind: input, shape index: {}]   ;;  %s6516_s2 = inlined_call_operand.vmem [shape: bf16[18,32,128], index: 2, kind: input, shape index: {}]   ;;  %s6517_s3 = inlined_call_operand.vmem [shape: f32[6,8,128], index: 3, kind: input, shape index: {}]   ;;  %s6518_s4 = inlined_call_operand.hbm [shape: f32[8,128], index: 4, kind: output, shape index: {}]  }
   0x1   :  { %v4766_v0 = vld [vmem:[%s6515_s1 + $0x74] ss:$8 sps:$4 sm:$0xff]   ;;  %v4768_v1 = vld [vmem:[%s6515_s1 + $0x70] ss:$8 sps:$4 sm:$0xff]   ;;  %150 = vmatprep.mubr.bf16.mxu0 %v5266_v2  ;;  %4618 = vmatprep.subr.bf16.mxu1 %v5267_v3  ;;  %v4769_v4 = vld [vmem:[%s6515_s1 + $0x64] ss:$8 sps:$4 sm:$0xff]  }
   0x2   :  { %118 = vmatprep.subr.bf16.mxu0 %v4766_v0  ;;  %v4771_v5 = vld [vmem:[%s6515_s1 + $0x60] ss:$8 sps:$4 sm:$0xff]   ;;  %v4772_v6 = vld [vmem:[%s6515_s1 + $0x54] ss:$8 sps:$4 sm:$0xff]   ;;  %v4774_v7 = vld [vmem:[%s6515_s1 + $0x50] ss:$8 sps:$4 sm:$0xff]   ;;  %4622 = vmatprep.mubr.msk.bf16.mxu1 %vm5268_vm0, %v5267_v3 }
   0x3   :  { %119 = vmatpush1.bf16.msra.mxu0 %v4768_v1  ;;  %v4775_v8 = vld [vmem:[%s6515_s1 + $0x44] ss:$8 sps:$4 sm:$0xff]   ;;  %v4777_v9 = vld [vmem:[%s6515_s1 + $0x40] ss:$8 sps:$4 sm:$0xff]   ;;  %v4778_v11 = vld [vmem:[%s6515_s1 + $0x34] ss:$8 sps:$4 sm:$0xff]  }
   0x4   :  { %120 = vmatprep.subr.bf16.mxu0 %v4769_v4  ;;  %v4790_v10 = vld [vmem:[%s6516_s2 + $0x8] sm:$0xff]   ;;  %v4780_v12 = vld [vmem:[%s6515_s1 + $0x30] ss:$8 sps:$4 sm:$0xff]   ;;  %v4784_v15 = vld [vmem:[%s6515_s1 + $0x14] ss:$8 sps:$4 sm:$0xff]  }
   0x5   :  { %4619 = vmatpush3.bf16.msra.mxu1 %v4790_v10  ;;  %v4781_v13 = vld [vmem:[%s6515_s1 + $0x24] ss:$8 sps:$4 sm:$0xff]   ;;  %v4783_v14 = vld [vmem:[%s6515_s1 + $0x20] ss:$8 sps:$4 sm:$0xff]   ;;  %v4786_v16 = vld [vmem:[%s6515_s1 + $0x10] ss:$8 sps:$4 sm:$0xff]  }
   0x6   :  { %4620 = vmatprep.subr.bf16.mxu1 %v5267_v3  ;;  %v4787_v17 = vld [vmem:[%s6515_s1 + $0x4] ss:$8 sps:$4 sm:$0xff]   ;;  %v4789_v18 = vld [vmem:[%s6515_s1] ss:$8 sps:$4 sm:$0xff]   ;;  %v4794_v22 = vld [vmem:[%s6515_s1 + $0xf4] ss:$8 sps:$4 sm:$0xff]  }
   0x7   :  { %121 = vmatpush1.bf16.msra.mxu0 %v4771_v5  ;;  %v5352_v19 = vld [vmem:[%s6514_s0] sm:$0xff] }
   0x8   :  { %122 = vmatprep.subr.bf16.mxu0 %v4772_v6  ;;  %v21_v20 = vpack.c.bf16 %v5352_v19, %v5352_v19  ;;  %v4791_v21 = vld [vmem:[%s6516_s2] sm:$0xff]  }
   0x9   :  { %4621 = vmatpush3.bf16.msra.mxu1 %v4791_v21 }
   0xa   :  { %325 = vmatprep.subr.bf16.mxu1 %v4794_v22 }
   0xb   :  { %123 = vmatpush1.bf16.msra.mxu0 %v4774_v7 }
   0xc   :  { %124 = vmatprep.subr.bf16.mxu0 %v4775_v8 }
   0xf   :  { %125 = vmatpush1.bf16.msra.mxu0 %v4777_v9 }
  0x10   :  { %126 = vmatprep.subr.bf16.mxu0 %v4778_v11 }
  0x13   :  { %127 = vmatpush1.bf16.msra.mxu0 %v4780_v12 }
  0x14   :  { %128 = vmatprep.subr.bf16.mxu0 %v4781_v13 }
  0x17   :  { %129 = vmatpush1.bf16.msra.mxu0 %v4783_v14 }
  0x18   :  { %130 = vmatprep.subr.bf16.mxu0 %v4784_v15 }
  0x1b   :  { %131 = vmatpush1.bf16.msra.mxu0 %v4786_v16 }
  0x1c   :  { %132 = vmatprep.subr.bf16.mxu0 %v4787_v17 }
  0x1f   :  { %133 = vmatpush1.bf16.msra.mxu0 %v4789_v18 }
  0x20   :  { %4626 = vmatprep.subr.bf16.mxu0 %v5267_v3 }
  0x22   :  { %151 = vmatmul.mubr.bf16.vlgmr.msra.gmra.mxu0 %v21_v20 }
  0x23   :  { %4630 = vmatprep.mubr.msk.bf16.mxu0 %vm5268_vm0, %v5267_v3 }
  0x24   :  { %9 = vsyncpa [#allocation3], 0  ;;  %vm181_vm1 = vcmask 261120   ;;  %v4792_v25 = vld [vmem:[%s6515_s1 + $0xf0] ss:$8 sps:$4 sm:$0xff]   ;;  %v159_v44 = vlaneseq  ;;  %v5427_v47 = vld [vmem:[%s6517_s3] sm:$0xff] }
  0x25   :  { %v4797_v27 = vld [vmem:[%s6515_s1 + $0xe4] ss:$8 sps:$4 sm:$0xff]   ;;  %v4795_v30 = vld [vmem:[%s6515_s1 + $0xe0] ss:$8 sps:$4 sm:$0xff]   ;;  %v4800_v31 = vld [vmem:[%s6515_s1 + $0xd4] ss:$8 sps:$4 sm:$0xff]  }
  0x26   :  { %v4798_v32 = vld [vmem:[%s6515_s1 + $0xd0] ss:$8 sps:$4 sm:$0xff]   ;;  %v4803_v33 = vld [vmem:[%s6515_s1 + $0xc4] ss:$8 sps:$4 sm:$0xff]   ;;  %v4801_v34 = vld [vmem:[%s6515_s1 + $0xc0] ss:$8 sps:$4 sm:$0xff]  }
  0x27   :  { %v4806_v35 = vld [vmem:[%s6515_s1 + $0xb4] ss:$8 sps:$4 sm:$0xff]   ;;  %v4804_v36 = vld [vmem:[%s6515_s1 + $0xb0] ss:$8 sps:$4 sm:$0xff]   ;;  %v4809_v37 = vld [vmem:[%s6515_s1 + $0xa4] ss:$8 sps:$4 sm:$0xff]  }
  0x28   :  { %v4807_v38 = vld [vmem:[%s6515_s1 + $0xa0] ss:$8 sps:$4 sm:$0xff]   ;;  %v4812_v39 = vld [vmem:[%s6515_s1 + $0x94] ss:$8 sps:$4 sm:$0xff]   ;;  %v4810_v40 = vld [vmem:[%s6515_s1 + $0x90] ss:$8 sps:$4 sm:$0xff]  }
  0x29   :  { %v4815_v41 = vld [vmem:[%s6515_s1 + $0x84] ss:$8 sps:$4 sm:$0xff]   ;;  %v4813_v42 = vld [vmem:[%s6515_s1 + $0x80] ss:$8 sps:$4 sm:$0xff]   ;;  %v4816_v43 = vld [vmem:[%s6516_s2 + $0x18] sm:$0xff]   ;;  %v5419_v45 = vshrl.u32 %v159_v44, 7 }
  0x2a   :  { %4627 = vmatpush3.bf16.msra.mxu0 %v4816_v43  ;;  %v4817_v57 = vld [vmem:[%s6516_s2 + $0x10] sm:$0xff]   ;;  %v4823_v63 = vld [vmem:[%s6515_s1 + $0x164] ss:$8 sps:$4 sm:$0xff]   ;;  %v4821_v4 = vld [vmem:[%s6515_s1 + $0x160] ss:$8 sps:$4 sm:$0xff]   ;;  %s5269_s0 = smov [#allocation2]  }
  0x2b   :  { %4628 = vmatprep.subr.bf16.mxu0 %v5267_v3  ;;  %v5422_v46 = vsub.s32 0, %v5419_v45  ;;  %v4820_v58 = vld [vmem:[%s6515_s1 + $0x174] ss:$8 sps:$4 sm:$0xff]   ;;  %v4818_v61 = vld [vmem:[%s6515_s1 + $0x170] ss:$8 sps:$4 sm:$0xff]   ;;  %v4842_v17 = vld [vmem:[%s6516_s2 + $0x28] sm:$0xff]  }
  0x2c   :  { %v4826_v5 = vld [vmem:[%s6515_s1 + $0x154] ss:$8 sps:$4 sm:$0xff]   ;;  %v4824_v6 = vld [vmem:[%s6515_s1 + $0x150] ss:$8 sps:$4 sm:$0xff]   ;;  %v4829_v7 = vld [vmem:[%s6515_s1 + $0x144] ss:$8 sps:$4 sm:$0xff]  }
  0x2d   :  { %v162_v48 = vrot.slane %v5427_v47, %v5422_v46  ;;  %v4827_v8 = vld [vmem:[%s6515_s1 + $0x140] ss:$8 sps:$4 sm:$0xff]   ;;  %v4832_v9 = vld [vmem:[%s6515_s1 + $0x134] ss:$8 sps:$4 sm:$0xff]   ;;  %v4830_v10 = vld [vmem:[%s6515_s1 + $0x130] ss:$8 sps:$4 sm:$0xff]  }
  0x2e   :  { %4629 = vmatpush3.bf16.msra.mxu0 %v4817_v57  ;;  %v4835_v11 = vld [vmem:[%s6515_s1 + $0x124] ss:$8 sps:$4 sm:$0xff]   ;;  %v4833_v12 = vld [vmem:[%s6515_s1 + $0x120] ss:$8 sps:$4 sm:$0xff]   ;;  %v4838_v13 = vld [vmem:[%s6515_s1 + $0x114] ss:$8 sps:$4 sm:$0xff]  }
  0x2f   :  { %532 = vmatprep.subr.bf16.mxu0 %v4820_v58  ;;  %v4836_v14 = vld [vmem:[%s6515_s1 + $0x110] ss:$8 sps:$4 sm:$0xff]   ;;  %v4841_v15 = vld [vmem:[%s6515_s1 + $0x104] ss:$8 sps:$4 sm:$0xff]   ;;  %v4839_v16 = vld [vmem:[%s6515_s1 + $0x100] ss:$8 sps:$4 sm:$0xff]  }
  0x30   :  { %v5492_v18 = vsub.s32 1, %v5419_v45  ;;  %v4844_v44 = vld [vmem:[%s6515_s1 + $0x1f0] ss:$8 sps:$4 sm:$0xff]   ;;  %v4855_v57 = vld [vmem:[%s6515_s1 + $0x1c4] ss:$8 sps:$4 sm:$0xff]   ;;  %s3869_s27 = sshll.u32 %s5269_s0, 4  ;;  %s3870_s27 = int_to_ptr.vmem [resolvable:$true] %s3869_s27 }
  0x31   :  { %v4858_v58 = vld [vmem:[%s6515_s1 + $0x1b4] ss:$8 sps:$4 sm:$0xff]   ;;  %p5249_p1 = scmp.lt.s32.totalorder %s3870_s27, %s3870_s27 }
  0x32   :  { %v369_v20 = vrot.slane %v5427_v47, %v5492_v18 }
  0xe2   :  { %v152_v23 = vpop.f32.mrf.mxu0 }
  0xe3   :  { %v163_v49 = vadd.f32 %v162_v48, %v152_v23  ;;  %v4846_v48 = vld [vmem:[%s6515_s1 + $0x1f4] ss:$8 sps:$4 sm:$0xff]  }
  0xe4   :  { %v154_v24 = vpop.f32.mrf.mxu0 }
  0xe5   :  { %v164_v26 = vpack.c.bf16 %v154_v24, %v154_v24 }
  0xe6   :  { %v156_v28 = vpop.f32.mrf.mxu0 }
  0xe7   :  { %4623 = vmatmul.mubr.msk.bf16.vlgmr.msra.gmra.mxu1 %vm181_vm1, %v164_v26 }
  0xe8   :  { %v157_v29 = vpop.f32.mrf.mxu0  ;;  %326 = vmatpush1.bf16.msra.mxu1 %v4792_v25  ;;  %357 = vmatprep.mubr.bf16.mxu1 %v5266_v2 }
  0xe9   :  { %327 = vmatprep.subr.bf16.mxu1 %v4797_v27  ;;  %v4843_v29 = vld [vmem:[%s6516_s2 + $0x20] sm:$0xff]  }
  0xec   :  { %328 = vmatpush1.bf16.msra.mxu1 %v4795_v30 }
  0xed   :  { %329 = vmatprep.subr.bf16.mxu1 %v4800_v31 }
  0xf0   :  { %330 = vmatpush1.bf16.msra.mxu1 %v4798_v32 }
  0xf1   :  { %331 = vmatprep.subr.bf16.mxu1 %v4803_v33 }
  0xf4   :  { %332 = vmatpush1.bf16.msra.mxu1 %v4801_v34 }
  0xf5   :  { %333 = vmatprep.subr.bf16.mxu1 %v4806_v35  ;;  %v5504_v35 = vsub.s32 2, %v5419_v45 }
  0xf8   :  { %334 = vmatpush1.bf16.msra.mxu1 %v4804_v36  ;;  %v576_v36 = vrot.slane %v5427_v47, %v5504_v35 }
  0xf9   :  { %335 = vmatprep.subr.bf16.mxu1 %v4809_v37 }
  0xfc   :  { %336 = vmatpush1.bf16.msra.mxu1 %v4807_v38 }
  0xfd   :  { %337 = vmatprep.subr.bf16.mxu1 %v4812_v39 }
 0x100   :  { %338 = vmatpush1.bf16.msra.mxu1 %v4810_v40 }
 0x101   :  { %339 = vmatprep.subr.bf16.mxu1 %v4815_v41 }
 0x104   :  { %340 = vmatpush1.bf16.msra.mxu1 %v4813_v42 }
 0x105   :  { %4634 = vmatprep.subr.bf16.mxu1 %v5267_v3 }
 0x1a7   :  { %v219_v50 = vpop.f32.mrf.mxu1 }
 0x1a8   :  { %v225_v51 = vadd.f32 %v219_v50, %v163_v49  ;;  %v4849_v49 = vld [vmem:[%s6515_s1 + $0x1e4] ss:$8 sps:$4 sm:$0xff]  }
 0x1a9   :  { %v4624_v52 = vpop.f32.mrf.mxu1 }
 0x1aa   :  { %v226_v53 = vmax.f32 %v225_v51, 0.0 }
 0x1ab   :  { %v222_v54 = vpop.f32.mrf.mxu1 }
 0x1ac   :  { %v227_v55 = vpack.c.bf16 %v226_v53, %v226_v53  ;;  %v4852_v54 = vld [vmem:[%s6515_s1 + $0x1d4] ss:$8 sps:$4 sm:$0xff]  }
 0x1ad   :  { %v4625_v56 = vpop.f32.mrf.mxu1 }
 0x1ae   :  { %358 = vmatmul.mubr.bf16.vlgmr.msra.gmra.mxu1 %v227_v55  ;;  %v4850_v55 = vld [vmem:[%s6515_s1 + $0x1d0] ss:$8 sps:$4 sm:$0xff]   ;;  %v4853_v56 = vld [vmem:[%s6515_s1 + $0x1c0] ss:$8 sps:$4 sm:$0xff]  }
 0x1af   :  { %4638 = vmatprep.mubr.msk.bf16.mxu1 %vm5268_vm0, %v5267_v3  ;;  %4635 = vmatpush3.bf16.msra.mxu1 %v4842_v17  ;;  %v4872_v17 = vld [vmem:[%s6515_s1 + $0x274] ss:$8 sps:$4 sm:$0xff]  }
 0x1b0   :  { %4636 = vmatprep.subr.bf16.mxu1 %v5267_v3 }
 0x1b3   :  { %4637 = vmatpush3.bf16.msra.mxu1 %v4843_v29  ;;  %v4881_v29 = vld [vmem:[%s6515_s1 + $0x244] ss:$8 sps:$4 sm:$0xff]  }
 0x1b4   :  { %763 = vmatprep.subr.bf16.mxu1 %v4846_v48 }
 0x26e   :  { %v359_v59 = vpop.f32.mrf.mxu1 }
 0x26f   :  { %v370_v21 = vadd.f32 %v369_v20, %v359_v59  ;;  %v4856_v59 = vld [vmem:[%s6515_s1 + $0x1b0] ss:$8 sps:$4 sm:$0xff]  }
 0x270   :  { %v361_v60 = vpop.f32.mrf.mxu1 }
 0x271   :  { %v371_v62 = vpack.c.bf16 %v361_v60, %v361_v60  ;;  %v4861_v60 = vld [vmem:[%s6515_s1 + $0x1a4] ss:$8 sps:$4 sm:$0xff]  }
 0x272   :  { %v363_v0 = vpop.f32.mrf.mxu1 }
 0x273   :  { %4631 = vmatmul.mubr.msk.bf16.vlgmr.msra.gmra.mxu0 %vm181_vm1, %v371_v62  ;;  %v4864_v62 = vld [vmem:[%s6515_s1 + $0x194] ss:$8 sps:$4 sm:$0xff]   ;;  %v4867_v0 = vld [vmem:[%s6515_s1 + $0x184] ss:$8 sps:$4 sm:$0xff]  }
 0x274   :  { %v364_v1 = vpop.f32.mrf.mxu1  ;;  %533 = vmatpush1.bf16.msra.mxu0 %v4818_v61  ;;  %564 = vmatprep.mubr.bf16.mxu0 %v5266_v2  ;;  %v4859_v61 = vld [vmem:[%s6515_s1 + $0x1a0] ss:$8 sps:$4 sm:$0xff]  }
 0x275   :  { %534 = vmatprep.subr.bf16.mxu0 %v4823_v63  ;;  %v4862_v63 = vld [vmem:[%s6515_s1 + $0x190] ss:$8 sps:$4 sm:$0xff]   ;;  %v4865_v1 = vld [vmem:[%s6515_s1 + $0x180] ss:$8 sps:$4 sm:$0xff]  }
 0x278   :  { %535 = vmatpush1.bf16.msra.mxu0 %v4821_v4  ;;  %v4868_v4 = vld [vmem:[%s6516_s2 + $0x38] sm:$0xff]  }
 0x279   :  { %536 = vmatprep.subr.bf16.mxu0 %v4826_v5 }
 0x27c   :  { %537 = vmatpush1.bf16.msra.mxu0 %v4824_v6 }
 0x27d   :  { %538 = vmatprep.subr.bf16.mxu0 %v4829_v7 }
 0x280   :  { %539 = vmatpush1.bf16.msra.mxu0 %v4827_v8  ;;  %v5563_v8 = vsub.s32 3, %v5419_v45 }
 0x281   :  { %540 = vmatprep.subr.bf16.mxu0 %v4832_v9  ;;  %v5566_v9 = vsub.s32 4, %v5419_v45  ;;  %v4869_v45 = vld [vmem:[%s6516_s2 + $0x30] sm:$0xff]  }
 0x284   :  { %541 = vmatpush1.bf16.msra.mxu0 %v4830_v10  ;;  %v656_v10 = vrot.slane %v5427_v47, %v5563_v8 }
 0x285   :  { %542 = vmatprep.subr.bf16.mxu0 %v4835_v11 }
 0x288   :  { %543 = vmatpush1.bf16.msra.mxu0 %v4833_v12 }
 0x289   :  { %544 = vmatprep.subr.bf16.mxu0 %v4838_v13  ;;  %v661_v13 = vrot.slane %v5427_v47, %v5566_v9 }
 0x28c   :  { %545 = vmatpush1.bf16.msra.mxu0 %v4836_v14 }
 0x28d   :  { %546 = vmatprep.subr.bf16.mxu0 %v4841_v15 }
 0x290   :  { %547 = vmatpush1.bf16.msra.mxu0 %v4839_v16 }
 0x291   :  { %4642 = vmatprep.subr.bf16.mxu0 %v5267_v3 }
 0x333   :  { %v426_v22 = vpop.f32.mrf.mxu0 }
 0x334   :  { %v432_v23 = vadd.f32 %v426_v22, %v370_v21  ;;  %v4870_v21 = vld [vmem:[%s6515_s1 + $0x270] ss:$8 sps:$4 sm:$0xff]  }
 0x335   :  { %v4632_v24 = vpop.f32.mrf.mxu0 }
 0x336   :  { %v433_v25 = vmax.f32 %v432_v23, 0.0  ;;  %v4875_v23 = vld [vmem:[%s6515_s1 + $0x264] ss:$8 sps:$4 sm:$0xff]  }
 0x337   :  { %v429_v26 = vpop.f32.mrf.mxu0 }
 0x338   :  { %v434_v27 = vpack.c.bf16 %v433_v25, %v433_v25  ;;  %v4873_v26 = vld [vmem:[%s6515_s1 + $0x260] ss:$8 sps:$4 sm:$0xff]  }
 0x339   :  { %v4633_v28 = vpop.f32.mrf.mxu0 }
 0x33a   :  { %565 = vmatmul.mubr.bf16.vlgmr.msra.gmra.mxu0 %v434_v27  ;;  %v4878_v27 = vld [vmem:[%s6515_s1 + $0x254] ss:$8 sps:$4 sm:$0xff]   ;;  %v4876_v28 = vld [vmem:[%s6515_s1 + $0x250] ss:$8 sps:$4 sm:$0xff]  }
 0x33b   :  { %4646 = vmatprep.mubr.msk.bf16.mxu0 %vm5268_vm0, %v5267_v3  ;;  %4643 = vmatpush3.bf16.msra.mxu0 %v4868_v4  ;;  %v4905_v4 = vld [vmem:[%s6515_s1 + $0x2c0] ss:$8 sps:$4 sm:$0xff]  }
 0x33c   :  { %4644 = vmatprep.subr.bf16.mxu0 %v5267_v3 }
 0x33f   :  { %4645 = vmatpush3.bf16.msra.mxu0 %v4869_v45 }
 0x340   :  { %970 = vmatprep.subr.bf16.mxu0 %v4872_v17 }
 0x3fa   :  { %v566_v30 = vpop.f32.mrf.mxu0 }
 0x3fb   :  { %v577_v37 = vadd.f32 %v576_v36, %v566_v30  ;;  %v4879_v30 = vld [vmem:[%s6515_s1 + $0x240] ss:$8 sps:$4 sm:$0xff]   ;;  %v4890_v36 = vld [vmem:[%s6515_s1 + $0x214] ss:$8 sps:$4 sm:$0xff]  }
 0x3fc   :  { %v568_v31 = vpop.f32.mrf.mxu0 }
 0x3fd   :  { %v578_v32 = vpack.c.bf16 %v568_v31, %v568_v31  ;;  %v4884_v31 = vld [vmem:[%s6515_s1 + $0x234] ss:$8 sps:$4 sm:$0xff]  }
 0x3fe   :  { %v570_v33 = vpop.f32.mrf.mxu0 }
 0x3ff   :  { %4639 = vmatmul.mubr.msk.bf16.vlgmr.msra.gmra.mxu1 %vm181_vm1, %v578_v32  ;;  %v4882_v32 = vld [vmem:[%s6515_s1 + $0x230] ss:$8 sps:$4 sm:$0xff]   ;;  %v4887_v33 = vld [vmem:[%s6515_s1 + $0x224] ss:$8 sps:$4 sm:$0xff]  }
 0x400   :  { %v571_v34 = vpop.f32.mrf.mxu0  ;;  %795 = vmatprep.mubr.bf16.mxu1 %v5266_v2  ;;  %764 = vmatpush1.bf16.msra.mxu1 %v4844_v44 }
 0x401   :  { %765 = vmatprep.subr.bf16.mxu1 %v4849_v49  ;;  %v4885_v34 = vld [vmem:[%s6515_s1 + $0x220] ss:$8 sps:$4 sm:$0xff]  }
 0x4bf   :  { %v633_v38 = vpop.f32.mrf.mxu1 }
 0x4c0   :  { %v639_v39 = vadd.f32 %v633_v38, %v577_v37  ;;  %v4888_v37 = vld [vmem:[%s6515_s1 + $0x210] ss:$8 sps:$4 sm:$0xff]   ;;  %v4893_v38 = vld [vmem:[%s6515_s1 + $0x204] ss:$8 sps:$4 sm:$0xff]  }
 0x4c1   :  { %v4640_v40 = vpop.f32.mrf.mxu1 }
 0x4c2   :  { %v640_v41 = vadd.f32 %v639_v39, %v5352_v19  ;;  %v4847_v19 = vld [vmem:[%s6515_s1 + $0x1e0] ss:$8 sps:$4 sm:$0xff]  }
 0x4c3   :  { %v636_v42 = vpop.f32.mrf.mxu1  ;;  %766 = vmatpush1.bf16.msra.mxu1 %v4847_v19  ;;  %v4891_v39 = vld [vmem:[%s6515_s1 + $0x200] ss:$8 sps:$4 sm:$0xff]  }
 0x4c4   :  { %641 = vadd.xlane.f32.xlu0 %v640_v41  ;;  %767 = vmatprep.subr.bf16.mxu1 %v4852_v54  ;;  %v4894_v40 = vld [vmem:[%s6516_s2 + $0x48] sm:$0xff]   ;;  %v4898_v54 = vld [vmem:[%s6515_s1 + $0x2f4] ss:$8 sps:$4 sm:$0xff]  }
 0x4c5   :  { %v4641_v43 = vpop.f32.mrf.mxu1 }
 0x4c7   :  { %768 = vmatpush1.bf16.msra.mxu1 %v4850_v55 }
 0x4c8   :  { %769 = vmatprep.subr.bf16.mxu1 %v4855_v57  ;;  %v4896_v57 = vld [vmem:[%s6515_s1 + $0x2f0] ss:$8 sps:$4 sm:$0xff]  }
 0x4cb   :  { %770 = vmatpush1.bf16.msra.mxu1 %v4853_v56 }
 0x4cc   :  { %771 = vmatprep.subr.bf16.mxu1 %v4858_v58 }
 0x4cf   :  { %772 = vmatpush1.bf16.msra.mxu1 %v4856_v59  ;;  %v4901_v59 = vld [vmem:[%s6515_s1 + $0x2e4] ss:$8 sps:$4 sm:$0xff]  }
 0x4d0   :  { %773 = vmatprep.subr.bf16.mxu1 %v4861_v60 }
 0x4d3   :  { %774 = vmatpush1.bf16.msra.mxu1 %v4859_v61 }
 0x4d4   :  { %775 = vmatprep.subr.bf16.mxu1 %v4864_v62  ;;  %v4899_v62 = vld [vmem:[%s6515_s1 + $0x2e0] ss:$8 sps:$4 sm:$0xff]  }
 0x4d7   :  { %776 = vmatpush1.bf16.msra.mxu1 %v4862_v63  ;;  %v4904_v63 = vld [vmem:[%s6515_s1 + $0x2d4] ss:$8 sps:$4 sm:$0xff]  }
 0x4d8   :  { %777 = vmatprep.subr.bf16.mxu1 %v4867_v0  ;;  %v4902_v0 = vld [vmem:[%s6515_s1 + $0x2d0] ss:$8 sps:$4 sm:$0xff]  }
 0x4db   :  { %778 = vmatpush1.bf16.msra.mxu1 %v4865_v1  ;;  %v4907_v1 = vld [vmem:[%s6515_s1 + $0x2c4] ss:$8 sps:$4 sm:$0xff]  }
 0x4dc   :  { %4650 = vmatprep.subr.bf16.mxu1 %v5267_v3 }
 0x54d   :  { %v642_v50 = vpop.xlane.xlu0 %641 }
 0x54e   :  { %v644_v51 = vmul.f32 0.0078125, %v642_v50 }
 0x550   :  { %v645_v52 = vsub.f32 %v640_v41, %v644_v51  ;;  %v5639_v41 = vld [vmem:[%s6517_s3 + $0x8] sm:$0xff] }
 0x551   :  { %v807_v42 = vrot.slane %v5639_v41, %v5422_v46  ;;  %v1014_v45 = vrot.slane %v5639_v41, %v5492_v18 }
 0x552   :  { %v646_v53 = vmul.f32 %v645_v52, %v645_v52 }
 0x554   :  { %647 = vadd.xlane.f32.xlu0 %v646_v53  ;;  %v4895_v53 = vld [vmem:[%s6516_s2 + $0x40] sm:$0xff]  }
 0x5dd   :  { %v648_v5 = vpop.xlane.xlu0 %647 }
 0x5de   :  { %v649_v6 = vmul.f32 0.0078125, %v648_v5  ;;  %v4910_v5 = vld [vmem:[%s6515_s1 + $0x2b4] ss:$8 sps:$4 sm:$0xff]  }
 0x5e0   :  { %v650_v7 = vadd.f32 1e-05, %v649_v6  ;;  %v4908_v6 = vld [vmem:[%s6515_s1 + $0x2b0] ss:$8 sps:$4 sm:$0xff]  }
 0x5e2   :  { %5234 = vrsqrt.f32 %v650_v7  ;;  %v4913_v7 = vld [vmem:[%s6515_s1 + $0x2a4] ss:$8 sps:$4 sm:$0xff]  }
 0x5ef   :  { %v5235_v11 = vpop.eup %5234 }
 0x5f0   :  { %v652_v12 = vmul.f32 %v5235_v11, %v645_v52  ;;  %v4916_v11 = vld [vmem:[%s6515_s1 + $0x294] ss:$8 sps:$4 sm:$0xff]  }
 0x5f2   :  { %v657_v14 = vmul.f32 %v656_v10, %v652_v12  ;;  %v4911_v10 = vld [vmem:[%s6515_s1 + $0x2a0] ss:$8 sps:$4 sm:$0xff]   ;;  %v4914_v12 = vld [vmem:[%s6515_s1 + $0x290] ss:$8 sps:$4 sm:$0xff]  }
 0x5f4   :  { %v5572_v15 = vadd.f32 %v661_v13, %v657_v14  ;;  %v4919_v13 = vld [vmem:[%s6515_s1 + $0x284] ss:$8 sps:$4 sm:$0xff]   ;;  %v4917_v14 = vld [vmem:[%s6515_s1 + $0x280] ss:$8 sps:$4 sm:$0xff]  }
 0x5f6   :  { %v665_v16 = vpack.c.bf16 %v5572_v15, %v5572_v15 }
 0x5f8   :  { %796 = vmatmul.mubr.bf16.vlgmr.msra.gmra.mxu1 %v665_v16  ;;  %v4920_v16 = vld [vmem:[%s6516_s2 + $0x58] sm:$0xff]  }
 0x5f9   :  { %4654 = vmatprep.mubr.msk.bf16.mxu1 %vm5268_vm0, %v5267_v3  ;;  %4651 = vmatpush3.bf16.msra.mxu1 %v4894_v40 }
 0x5fa   :  { %4652 = vmatprep.subr.bf16.mxu1 %v5267_v3 }
 0x5fd   :  { %4653 = vmatpush3.bf16.msra.mxu1 %v4895_v53  ;;  %v4931_v53 = vld [vmem:[%s6515_s1 + $0x340] ss:$8 sps:$4 sm:$0xff]  }
 0x5fe   :  { %1177 = vmatprep.subr.bf16.mxu1 %v4898_v54  ;;  %v4933_v54 = vld [vmem:[%s6515_s1 + $0x344] ss:$8 sps:$4 sm:$0xff]  }
 0x6b8   :  { %v797_v47 = vpop.f32.mrf.mxu1 }
 0x6b9   :  { %v808_v43 = vadd.f32 %v807_v42, %v797_v47  ;;  %v4922_v42 = vld [vmem:[%s6515_s1 + $0x370] ss:$8 sps:$4 sm:$0xff]  }
 0x6ba   :  { %v799_v20 = vpop.f32.mrf.mxu1 }
 0x6bb   :  { %v809_v22 = vpack.c.bf16 %v799_v20, %v799_v20 }
 0x6bc   :  { %v801_v24 = vpop.f32.mrf.mxu1 }
 0x6bd   :  { %4647 = vmatmul.mubr.msk.bf16.vlgmr.msra.gmra.mxu0 %vm181_vm1, %v809_v22 }
 0x6be   :  { %v802_v25 = vpop.f32.mrf.mxu1  ;;  %971 = vmatpush1.bf16.msra.mxu0 %v4870_v21  ;;  %1002 = vmatprep.mubr.bf16.mxu0 %v5266_v2 }
 0x6bf   :  { %972 = vmatprep.subr.bf16.mxu0 %v4875_v23 }
 0x6c2   :  { %973 = vmatpush1.bf16.msra.mxu0 %v4873_v26  ;;  %v4921_v26 = vld [vmem:[%s6516_s2 + $0x50] sm:$0xff]  }
 0x6c3   :  { %974 = vmatprep.subr.bf16.mxu0 %v4878_v27 }
 0x6c6   :  { %975 = vmatpush1.bf16.msra.mxu0 %v4876_v28 }
 0x6c7   :  { %976 = vmatprep.subr.bf16.mxu0 %v4881_v29 }
 0x6ca   :  { %977 = vmatpush1.bf16.msra.mxu0 %v4879_v30 }
 0x6cb   :  { %978 = vmatprep.subr.bf16.mxu0 %v4884_v31 }
 0x6ce   :  { %979 = vmatpush1.bf16.msra.mxu0 %v4882_v32  ;;  %v1221_v32 = vrot.slane %v5639_v41, %v5504_v35 }
 0x6cf   :  { %980 = vmatprep.subr.bf16.mxu0 %v4887_v33 }
 0x6d2   :  { %981 = vmatpush1.bf16.msra.mxu0 %v4885_v34 }
 0x6d3   :  { %982 = vmatprep.subr.bf16.mxu0 %v4890_v36 }
 0x6d6   :  { %983 = vmatpush1.bf16.msra.mxu0 %v4888_v37 }
 0x6d7   :  { %984 = vmatprep.subr.bf16.mxu0 %v4893_v38 }
 0x6da   :  { %985 = vmatpush1.bf16.msra.mxu0 %v4891_v39 }
 0x6db   :  { %4658 = vmatprep.subr.bf16.mxu0 %v5267_v3 }
 0x77d   :  { %v864_v44 = vpop.f32.mrf.mxu0 }
 0x77e   :  { %v870_v48 = vadd.f32 %v864_v44, %v808_v43  ;;  %v4924_v43 = vld [vmem:[%s6515_s1 + $0x374] ss:$8 sps:$4 sm:$0xff]   ;;  %v4927_v44 = vld [vmem:[%s6515_s1 + $0x364] ss:$8 sps:$4 sm:$0xff]  }
 0x77f   :  { %v4648_v49 = vpop.f32.mrf.mxu0 }
 0x780   :  { %v871_v19 = vmax.f32 %v870_v48, 0.0 }
 0x781   :  { %v867_v50 = vpop.f32.mrf.mxu0 }
 0x782   :  { %v872_v51 = vpack.c.bf16 %v871_v19, %v871_v19 }
 0x783   :  { %v4649_v52 = vpop.f32.mrf.mxu0 }
 0x784   :  { %1003 = vmatmul.mubr.bf16.vlgmr.msra.gmra.mxu0 %v872_v51  ;;  %v4930_v51 = vld [vmem:[%s6515_s1 + $0x354] ss:$8 sps:$4 sm:$0xff]   ;;  %v4928_v52 = vld [vmem:[%s6515_s1 + $0x350] ss:$8 sps:$4 sm:$0xff]  }
 0x785   :  { %4662 = vmatprep.mubr.msk.bf16.mxu0 %vm5268_vm0, %v5267_v3  ;;  %4659 = vmatpush3.bf16.msra.mxu0 %v4920_v16  ;;  %v4950_v16 = vld [vmem:[%s6515_s1 + $0x3f4] ss:$8 sps:$4 sm:$0xff]  }
 0x786   :  { %4660 = vmatprep.subr.bf16.mxu0 %v5267_v3 }
 0x789   :  { %4661 = vmatpush3.bf16.msra.mxu0 %v4921_v26  ;;  %v4959_v26 = vld [vmem:[%s6515_s1 + $0x3c4] ss:$8 sps:$4 sm:$0xff]  }
 0x78a   :  { %1407 = vmatprep.subr.bf16.mxu0 %v4924_v43 }
 0x844   :  { %v1004_v55 = vpop.f32.mrf.mxu0 }
 0x845   :  { %v1015_v17 = vadd.f32 %v1014_v45, %v1004_v55  ;;  %v4936_v55 = vld [vmem:[%s6515_s1 + $0x334] ss:$8 sps:$4 sm:$0xff]  }
 0x846   :  { %v1006_v56 = vpop.f32.mrf.mxu0 }
 0x847   :  { %v1016_v58 = vpack.c.bf16 %v1006_v56, %v1006_v56  ;;  %v4934_v56 = vld [vmem:[%s6515_s1 + $0x330] ss:$8 sps:$4 sm:$0xff]  }
 0x848   :  { %v1008_v60 = vpop.f32.mrf.mxu0 }
 0x849   :  { %4655 = vmatmul.mubr.msk.bf16.vlgmr.msra.gmra.mxu1 %vm181_vm1, %v1016_v58  ;;  %v4937_v58 = vld [vmem:[%s6515_s1 + $0x320] ss:$8 sps:$4 sm:$0xff]   ;;  %v4940_v60 = vld [vmem:[%s6515_s1 + $0x310] ss:$8 sps:$4 sm:$0xff]  }
 0x84a   :  { %v1009_v61 = vpop.f32.mrf.mxu0  ;;  %1178 = vmatpush1.bf16.msra.mxu1 %v4896_v57  ;;  %1209 = vmatprep.mubr.bf16.mxu1 %v5266_v2  ;;  %v4939_v57 = vld [vmem:[%s6515_s1 + $0x324] ss:$8 sps:$4 sm:$0xff]  }
 0x84b   :  { %1179 = vmatprep.subr.bf16.mxu1 %v4901_v59  ;;  %v4942_v59 = vld [vmem:[%s6515_s1 + $0x314] ss:$8 sps:$4 sm:$0xff]   ;;  %v4945_v61 = vld [vmem:[%s6515_s1 + $0x304] ss:$8 sps:$4 sm:$0xff]  }
 0x84e   :  { %1180 = vmatpush1.bf16.msra.mxu1 %v4899_v62  ;;  %v4943_v62 = vld [vmem:[%s6515_s1 + $0x300] ss:$8 sps:$4 sm:$0xff]  }
 0x84f   :  { %1181 = vmatprep.subr.bf16.mxu1 %v4904_v63  ;;  %v4946_v63 = vld [vmem:[%s6516_s2 + $0x68] sm:$0xff]  }
 0x852   :  { %1182 = vmatpush1.bf16.msra.mxu1 %v4902_v0 }
 0x853   :  { %1183 = vmatprep.subr.bf16.mxu1 %v4907_v1 }
 0x856   :  { %1184 = vmatpush1.bf16.msra.mxu1 %v4905_v4 }
 0x857   :  { %1185 = vmatprep.subr.bf16.mxu1 %v4910_v5  ;;  %v1300_v5 = vrot.slane %v5639_v41, %v5563_v8 }
 0x85a   :  { %1186 = vmatpush1.bf16.msra.mxu1 %v4908_v6 }
 0x85b   :  { %1187 = vmatprep.subr.bf16.mxu1 %v4913_v7 }
 0x85e   :  { %1188 = vmatpush1.bf16.msra.mxu1 %v4911_v10  ;;  %v1305_v10 = vrot.slane %v5639_v41, %v5566_v9 }
 0x85f   :  { %1189 = vmatprep.subr.bf16.mxu1 %v4916_v11 }
 0x862   :  { %1190 = vmatpush1.bf16.msra.mxu1 %v4914_v12 }
 0x863   :  { %1191 = vmatprep.subr.bf16.mxu1 %v4919_v13 }
 0x866   :  { %1192 = vmatpush1.bf16.msra.mxu1 %v4917_v14  ;;  %v4947_v14 = vld [vmem:[%s6516_s2 + $0x60] sm:$0xff]  }
 0x867   :  { %4666 = vmatprep.subr.bf16.mxu1 %v5267_v3 }
 0x909   :  { %v1071_v47 = vpop.f32.mrf.mxu1 }
 0x90a   :  { %v1077_v20 = vadd.f32 %v1071_v47, %v1015_v17  ;;  %v4948_v17 = vld [vmem:[%s6515_s1 + $0x3f0] ss:$8 sps:$4 sm:$0xff]  }
 0x90b   :  { %v4656_v21 = vpop.f32.mrf.mxu1 }
 0x90c   :  { %v1078_v22 = vmax.f32 %v1077_v20, 0.0  ;;  %v4953_v20 = vld [vmem:[%s6515_s1 + $0x3e4] ss:$8 sps:$4 sm:$0xff]  }
 0x90d   :  { %v1074_v23 = vpop.f32.mrf.mxu1 }
 0x90e   :  { %v1079_v24 = vpack.c.bf16 %v1078_v22, %v1078_v22  ;;  %v4951_v23 = vld [vmem:[%s6515_s1 + $0x3e0] ss:$8 sps:$4 sm:$0xff]  }
 0x90f   :  { %v4657_v25 = vpop.f32.mrf.mxu1 }
 0x910   :  { %1210 = vmatmul.mubr.bf16.vlgmr.msra.gmra.mxu1 %v1079_v24  ;;  %v4956_v24 = vld [vmem:[%s6515_s1 + $0x3d4] ss:$8 sps:$4 sm:$0xff]   ;;  %v4954_v25 = vld [vmem:[%s6515_s1 + $0x3d0] ss:$8 sps:$4 sm:$0xff]  }
 0x911   :  { %4670 = vmatprep.mubr.msk.bf16.mxu1 %vm5268_vm0, %v5267_v3  ;;  %4667 = vmatpush3.bf16.msra.mxu1 %v4946_v63  ;;  %v4983_v63 = vld [vmem:[%s6515_s1 + $0x440] ss:$8 sps:$4 sm:$0xff]  }
 0x912   :  { %4668 = vmatprep.subr.bf16.mxu1 %v5267_v3 }
 0x915   :  { %4669 = vmatpush3.bf16.msra.mxu1 %v4947_v14 }
 0x916   :  { %1614 = vmatprep.subr.bf16.mxu1 %v4950_v16 }
 0x9d0   :  { %v1211_v27 = vpop.f32.mrf.mxu1 }
 0x9d1   :  { %v1222_v33 = vadd.f32 %v1221_v32, %v1211_v27  ;;  %v4957_v27 = vld [vmem:[%s6515_s1 + $0x3c0] ss:$8 sps:$4 sm:$0xff]   ;;  %v4968_v32 = vld [vmem:[%s6515_s1 + $0x394] ss:$8 sps:$4 sm:$0xff]  }
 0x9d2   :  { %v1213_v28 = vpop.f32.mrf.mxu1 }
 0x9d3   :  { %v1223_v29 = vpack.c.bf16 %v1213_v28, %v1213_v28  ;;  %v4962_v28 = vld [vmem:[%s6515_s1 + $0x3b4] ss:$8 sps:$4 sm:$0xff]  }
 0x9d4   :  { %v1215_v30 = vpop.f32.mrf.mxu1 }
 0x9d5   :  { %4663 = vmatmul.mubr.msk.bf16.vlgmr.msra.gmra.mxu0 %vm181_vm1, %v1223_v29  ;;  %v4960_v29 = vld [vmem:[%s6515_s1 + $0x3b0] ss:$8 sps:$4 sm:$0xff]   ;;  %v4965_v30 = vld [vmem:[%s6515_s1 + $0x3a4] ss:$8 sps:$4 sm:$0xff]  }
 0x9d6   :  { %v1216_v31 = vpop.f32.mrf.mxu1  ;;  %1439 = vmatprep.mubr.bf16.mxu0 %v5266_v2  ;;  %1408 = vmatpush1.bf16.msra.mxu0 %v4922_v42 }
 0x9d7   :  { %1409 = vmatprep.subr.bf16.mxu0 %v4927_v44  ;;  %v4963_v31 = vld [vmem:[%s6515_s1 + $0x3a0] ss:$8 sps:$4 sm:$0xff]  }
 0xa95   :  { %v1278_v34 = vpop.f32.mrf.mxu0 }
 0xa96   :  { %v1284_v36 = vadd.f32 %v1278_v34, %v1222_v33  ;;  %v4966_v33 = vld [vmem:[%s6515_s1 + $0x390] ss:$8 sps:$4 sm:$0xff]   ;;  %v4971_v34 = vld [vmem:[%s6515_s1 + $0x384] ss:$8 sps:$4 sm:$0xff]  }
 0xa97   :  { %v4664_v37 = vpop.f32.mrf.mxu0 }
 0xa98   :  { %v1285_v38 = vadd.f32 %v1284_v36, %v5572_v15  ;;  %v4925_v15 = vld [vmem:[%s6515_s1 + $0x360] ss:$8 sps:$4 sm:$0xff]   ;;  %v4972_v37 = vld [vmem:[%s6516_s2 + $0x78] sm:$0xff]  }
 0xa99   :  { %v1281_v39 = vpop.f32.mrf.mxu0  ;;  %1410 = vmatpush1.bf16.msra.mxu0 %v4925_v15  ;;  %v4969_v36 = vld [vmem:[%s6515_s1 + $0x380] ss:$8 sps:$4 sm:$0xff]  }
 0xa9a   :  { %1286 = vadd.xlane.f32.xlu1 %v1285_v38  ;;  %1411 = vmatprep.subr.bf16.mxu0 %v4930_v51  ;;  %v4976_v51 = vld [vmem:[%s6515_s1 + $0x474] ss:$8 sps:$4 sm:$0xff]  }
 0xa9b   :  { %v4665_v40 = vpop.f32.mrf.mxu0 }
 0xa9d   :  { %1412 = vmatpush1.bf16.msra.mxu0 %v4928_v52 }
 0xa9e   :  { %1413 = vmatprep.subr.bf16.mxu0 %v4933_v54  ;;  %v4974_v54 = vld [vmem:[%s6515_s1 + $0x470] ss:$8 sps:$4 sm:$0xff]  }
 0xaa1   :  { %1414 = vmatpush1.bf16.msra.mxu0 %v4931_v53 }
 0xaa2   :  { %1415 = vmatprep.subr.bf16.mxu0 %v4936_v55 }
 0xaa5   :  { %1416 = vmatpush1.bf16.msra.mxu0 %v4934_v56  ;;  %v4979_v56 = vld [vmem:[%s6515_s1 + $0x464] ss:$8 sps:$4 sm:$0xff]  }
 0xaa6   :  { %1417 = vmatprep.subr.bf16.mxu0 %v4939_v57 }
 0xaa9   :  { %1418 = vmatpush1.bf16.msra.mxu0 %v4937_v58 }
 0xaaa   :  { %1419 = vmatprep.subr.bf16.mxu0 %v4942_v59  ;;  %v4977_v59 = vld [vmem:[%s6515_s1 + $0x460] ss:$8 sps:$4 sm:$0xff]  }
 0xaad   :  { %1420 = vmatpush1.bf16.msra.mxu0 %v4940_v60  ;;  %v4982_v60 = vld [vmem:[%s6515_s1 + $0x454] ss:$8 sps:$4 sm:$0xff]  }
 0xaae   :  { %1421 = vmatprep.subr.bf16.mxu0 %v4945_v61  ;;  %v4980_v61 = vld [vmem:[%s6515_s1 + $0x450] ss:$8 sps:$4 sm:$0xff]  }
 0xab1   :  { %1422 = vmatpush1.bf16.msra.mxu0 %v4943_v62  ;;  %v4985_v62 = vld [vmem:[%s6515_s1 + $0x444] ss:$8 sps:$4 sm:$0xff]  }
 0xab2   :  { %4674 = vmatprep.subr.bf16.mxu0 %v5267_v3 }
 0xb23   :  { %v1287_v48 = vpop.xlane.xlu1 %1286 }
 0xb24   :  { %v1288_v49 = vmul.f32 0.0078125, %v1287_v48 }
 0xb26   :  { %v1289_v19 = vsub.f32 %v1285_v38, %v1288_v49  ;;  %v5839_v38 = vld [vmem:[%s6517_s3 + $0x10] sm:$0xff] }
 0xb27   :  { %v1451_v39 = vrot.slane %v5839_v38, %v5422_v46  ;;  %v1658_v14 = vrot.slane %v5839_v38, %v5492_v18 }
 0xb28   :  { %v1290_v50 = vmul.f32 %v1289_v19, %v1289_v19 }
 0xb2a   :  { %1291 = vadd.xlane.f32.xlu1 %v1290_v50  ;;  %v4973_v50 = vld [vmem:[%s6516_s2 + $0x70] sm:$0xff]  }
 0xbb3   :  { %v1292_v0 = vpop.xlane.xlu1 %1291 }
 0xbb4   :  { %v1293_v1 = vmul.f32 0.0078125, %v1292_v0  ;;  %v4988_v0 = vld [vmem:[%s6515_s1 + $0x434] ss:$8 sps:$4 sm:$0xff]  }
 0xbb6   :  { %v1294_v4 = vadd.f32 1e-05, %v1293_v1  ;;  %v4986_v1 = vld [vmem:[%s6515_s1 + $0x430] ss:$8 sps:$4 sm:$0xff]  }
 0xbb8   :  { %5236 = vrsqrt.f32 %v1294_v4  ;;  %v4991_v4 = vld [vmem:[%s6515_s1 + $0x424] ss:$8 sps:$4 sm:$0xff]  }
 0xbc5   :  { %v5237_v6 = vpop.eup %5236 }
 0xbc6   :  { %v1296_v7 = vmul.f32 %v5237_v6, %v1289_v19  ;;  %v4994_v6 = vld [vmem:[%s6515_s1 + $0x414] ss:$8 sps:$4 sm:$0xff]  }
 0xbc8   :  { %v1301_v11 = vmul.f32 %v1300_v5, %v1296_v7  ;;  %v4989_v5 = vld [vmem:[%s6515_s1 + $0x420] ss:$8 sps:$4 sm:$0xff]   ;;  %v4992_v7 = vld [vmem:[%s6515_s1 + $0x410] ss:$8 sps:$4 sm:$0xff]  }
 0xbca   :  { %v5772_v12 = vadd.f32 %v1305_v10, %v1301_v11  ;;  %v4997_v10 = vld [vmem:[%s6515_s1 + $0x404] ss:$8 sps:$4 sm:$0xff]   ;;  %v4995_v11 = vld [vmem:[%s6515_s1 + $0x400] ss:$8 sps:$4 sm:$0xff]  }
 0xbcc   :  { %v1309_v13 = vpack.c.bf16 %v5772_v12, %v5772_v12 }
 0xbce   :  { %1440 = vmatmul.mubr.bf16.vlgmr.msra.gmra.mxu0 %v1309_v13  ;;  %v4998_v13 = vld [vmem:[%s6516_s2 + $0x88] sm:$0xff]  }
 0xbcf   :  { %4678 = vmatprep.mubr.msk.bf16.mxu0 %vm5268_vm0, %v5267_v3  ;;  %4675 = vmatpush3.bf16.msra.mxu0 %v4972_v37 }
 0xbd0   :  { %4676 = vmatprep.subr.bf16.mxu0 %v5267_v3 }
 0xbd3   :  { %4677 = vmatpush3.bf16.msra.mxu0 %v4973_v50  ;;  %v5009_v50 = vld [vmem:[%s6515_s1 + $0x4c0] ss:$8 sps:$4 sm:$0xff]  }
 0xbd4   :  { %1821 = vmatprep.subr.bf16.mxu0 %v4976_v51  ;;  %v5011_v51 = vld [vmem:[%s6515_s1 + $0x4c4] ss:$8 sps:$4 sm:$0xff]  }
 0xc8e   :  { %v1441_v41 = vpop.f32.mrf.mxu0 }
 0xc8f   :  { %v1452_v40 = vadd.f32 %v1451_v39, %v1441_v41  ;;  %v5000_v39 = vld [vmem:[%s6515_s1 + $0x4f0] ss:$8 sps:$4 sm:$0xff]  }
 0xc90   :  { %v1443_v45 = vpop.f32.mrf.mxu0 }
 0xc91   :  { %v1453_v47 = vpack.c.bf16 %v1443_v45, %v1443_v45 }
 0xc92   :  { %v1445_v21 = vpop.f32.mrf.mxu0 }
 0xc93   :  { %4671 = vmatmul.mubr.msk.bf16.vlgmr.msra.gmra.mxu1 %vm181_vm1, %v1453_v47 }
 0xc94   :  { %v1446_v22 = vpop.f32.mrf.mxu0  ;;  %1615 = vmatpush1.bf16.msra.mxu1 %v4948_v17  ;;  %1646 = vmatprep.mubr.bf16.mxu1 %v5266_v2 }
 0xc95   :  { %1616 = vmatprep.subr.bf16.mxu1 %v4953_v20 }
 0xc98   :  { %1617 = vmatpush1.bf16.msra.mxu1 %v4951_v23  ;;  %v4999_v23 = vld [vmem:[%s6516_s2 + $0x80] sm:$0xff]  }
 0xc99   :  { %1618 = vmatprep.subr.bf16.mxu1 %v4956_v24 }
 0xc9c   :  { %1619 = vmatpush1.bf16.msra.mxu1 %v4954_v25 }
 0xc9d   :  { %1620 = vmatprep.subr.bf16.mxu1 %v4959_v26 }
 0xca0   :  { %1621 = vmatpush1.bf16.msra.mxu1 %v4957_v27 }
 0xca1   :  { %1622 = vmatprep.subr.bf16.mxu1 %v4962_v28 }
 0xca4   :  { %1623 = vmatpush1.bf16.msra.mxu1 %v4960_v29  ;;  %v1865_v29 = vrot.slane %v5839_v38, %v5504_v35 }
 0xca5   :  { %1624 = vmatprep.subr.bf16.mxu1 %v4965_v30 }
 0xca8   :  { %1625 = vmatpush1.bf16.msra.mxu1 %v4963_v31 }
 0xca9   :  { %1626 = vmatprep.subr.bf16.mxu1 %v4968_v32 }
 0xcac   :  { %1627 = vmatpush1.bf16.msra.mxu1 %v4966_v33 }
 0xcad   :  { %1628 = vmatprep.subr.bf16.mxu1 %v4971_v34 }
 0xcb0   :  { %1629 = vmatpush1.bf16.msra.mxu1 %v4969_v36 }
 0xcb1   :  { %4682 = vmatprep.subr.bf16.mxu1 %v5267_v3 }
 0xd53   :  { %v1508_v42 = vpop.f32.mrf.mxu1 }
 0xd54   :  { %v1514_v43 = vadd.f32 %v1508_v42, %v1452_v40  ;;  %v5002_v40 = vld [vmem:[%s6515_s1 + $0x4f4] ss:$8 sps:$4 sm:$0xff]   ;;  %v5005_v42 = vld [vmem:[%s6515_s1 + $0x4e4] ss:$8 sps:$4 sm:$0xff]  }
 0xd55   :  { %v4672_v44 = vpop.f32.mrf.mxu1 }
 0xd56   :  { %v1515_v15 = vmax.f32 %v1514_v43, 0.0 }
 0xd57   :  { %v1511_v48 = vpop.f32.mrf.mxu1 }
 0xd58   :  { %v1516_v49 = vpack.c.bf16 %v1515_v15, %v1515_v15 }
 0xd59   :  { %v4673_v19 = vpop.f32.mrf.mxu1 }
 0xd5a   :  { %1647 = vmatmul.mubr.bf16.vlgmr.msra.gmra.mxu1 %v1516_v49  ;;  %v5008_v49 = vld [vmem:[%s6515_s1 + $0x4d4] ss:$8 sps:$4 sm:$0xff]   ;;  %v5006_v19 = vld [vmem:[%s6515_s1 + $0x4d0] ss:$8 sps:$4 sm:$0xff]  }
 0xd5b   :  { %4686 = vmatprep.mubr.msk.bf16.mxu1 %vm5268_vm0, %v5267_v3  ;;  %4683 = vmatpush3.bf16.msra.mxu1 %v4998_v13  ;;  %v5028_v13 = vld [vmem:[%s6515_s1 + $0x574] ss:$8 sps:$4 sm:$0xff]  }
 0xd5c   :  { %4684 = vmatprep.subr.bf16.mxu1 %v5267_v3 }
 0xd5f   :  { %4685 = vmatpush3.bf16.msra.mxu1 %v4999_v23  ;;  %v5037_v23 = vld [vmem:[%s6515_s1 + $0x544] ss:$8 sps:$4 sm:$0xff]  }
 0xd60   :  { %2051 = vmatprep.subr.bf16.mxu1 %v5002_v40 }
 0xe1a   :  { %v1648_v52 = vpop.f32.mrf.mxu1 }
 0xe1b   :  { %v1659_v16 = vadd.f32 %v1658_v14, %v1648_v52  ;;  %v5014_v52 = vld [vmem:[%s6515_s1 + $0x4b4] ss:$8 sps:$4 sm:$0xff]  }
 0xe1c   :  { %v1650_v53 = vpop.f32.mrf.mxu1 }
 0xe1d   :  { %v1660_v55 = vpack.c.bf16 %v1650_v53, %v1650_v53  ;;  %v5012_v53 = vld [vmem:[%s6515_s1 + $0x4b0] ss:$8 sps:$4 sm:$0xff]  }
 0xe1e   :  { %v1652_v57 = vpop.f32.mrf.mxu1 }
 0xe1f   :  { %4679 = vmatmul.mubr.msk.bf16.vlgmr.msra.gmra.mxu0 %vm181_vm1, %v1660_v55  ;;  %v5015_v55 = vld [vmem:[%s6515_s1 + $0x4a0] ss:$8 sps:$4 sm:$0xff]   ;;  %v5018_v57 = vld [vmem:[%s6515_s1 + $0x490] ss:$8 sps:$4 sm:$0xff]  }
 0xe20   :  { %v1653_v58 = vpop.f32.mrf.mxu1  ;;  %1822 = vmatpush1.bf16.msra.mxu0 %v4974_v54  ;;  %1853 = vmatprep.mubr.bf16.mxu0 %v5266_v2  ;;  %v5017_v54 = vld [vmem:[%s6515_s1 + $0x4a4] ss:$8 sps:$4 sm:$0xff]  }
 0xe21   :  { %1823 = vmatprep.subr.bf16.mxu0 %v4979_v56  ;;  %v5020_v56 = vld [vmem:[%s6515_s1 + $0x494] ss:$8 sps:$4 sm:$0xff]   ;;  %v5023_v58 = vld [vmem:[%s6515_s1 + $0x484] ss:$8 sps:$4 sm:$0xff]  }
 0xe24   :  { %1824 = vmatpush1.bf16.msra.mxu0 %v4977_v59  ;;  %v5021_v59 = vld [vmem:[%s6515_s1 + $0x480] ss:$8 sps:$4 sm:$0xff]  }
 0xe25   :  { %1825 = vmatprep.subr.bf16.mxu0 %v4982_v60  ;;  %v5024_v60 = vld [vmem:[%s6516_s2 + $0x98] sm:$0xff]  }
 0xe28   :  { %1826 = vmatpush1.bf16.msra.mxu0 %v4980_v61 }
 0xe29   :  { %1827 = vmatprep.subr.bf16.mxu0 %v4985_v62 }
 0xe2c   :  { %1828 = vmatpush1.bf16.msra.mxu0 %v4983_v63 }
 0xe2d   :  { %1829 = vmatprep.subr.bf16.mxu0 %v4988_v0  ;;  %v1944_v0 = vrot.slane %v5839_v38, %v5563_v8 }
 0xe30   :  { %1830 = vmatpush1.bf16.msra.mxu0 %v4986_v1 }
 0xe31   :  { %1831 = vmatprep.subr.bf16.mxu0 %v4991_v4 }
 0xe34   :  { %1832 = vmatpush1.bf16.msra.mxu0 %v4989_v5  ;;  %v1949_v5 = vrot.slane %v5839_v38, %v5566_v9 }
 0xe35   :  { %1833 = vmatprep.subr.bf16.mxu0 %v4994_v6 }
 0xe38   :  { %1834 = vmatpush1.bf16.msra.mxu0 %v4992_v7 }
 0xe39   :  { %1835 = vmatprep.subr.bf16.mxu0 %v4997_v10 }
 0xe3c   :  { %1836 = vmatpush1.bf16.msra.mxu0 %v4995_v11  ;;  %v5025_v11 = vld [vmem:[%s6516_s2 + $0x90] sm:$0xff]  }
 0xe3d   :  { %4690 = vmatprep.subr.bf16.mxu0 %v5267_v3 }
 0xedf   :  { %v1715_v41 = vpop.f32.mrf.mxu0 }
 0xee0   :  { %v1721_v45 = vadd.f32 %v1715_v41, %v1659_v16  ;;  %v5026_v16 = vld [vmem:[%s6515_s1 + $0x570] ss:$8 sps:$4 sm:$0xff]  }
 0xee1   :  { %v4680_v17 = vpop.f32.mrf.mxu0 }
 0xee2   :  { %v1722_v47 = vmax.f32 %v1721_v45, 0.0  ;;  %v5031_v45 = vld [vmem:[%s6515_s1 + $0x564] ss:$8 sps:$4 sm:$0xff]  }
 0xee3   :  { %v1718_v20 = vpop.f32.mrf.mxu0 }
 0xee4   :  { %v1723_v21 = vpack.c.bf16 %v1722_v47, %v1722_v47  ;;  %v5029_v20 = vld [vmem:[%s6515_s1 + $0x560] ss:$8 sps:$4 sm:$0xff]  }
 0xee5   :  { %v4681_v22 = vpop.f32.mrf.mxu0 }
 0xee6   :  { %1854 = vmatmul.mubr.bf16.vlgmr.msra.gmra.mxu0 %v1723_v21  ;;  %v5034_v21 = vld [vmem:[%s6515_s1 + $0x554] ss:$8 sps:$4 sm:$0xff]   ;;  %v5032_v22 = vld [vmem:[%s6515_s1 + $0x550] ss:$8 sps:$4 sm:$0xff]  }
 0xee7   :  { %4694 = vmatprep.mubr.msk.bf16.mxu0 %vm5268_vm0, %v5267_v3  ;;  %4691 = vmatpush3.bf16.msra.mxu0 %v5024_v60  ;;  %v5061_v60 = vld [vmem:[%s6515_s1 + $0x5c0] ss:$8 sps:$4 sm:$0xff]  }
 0xee8   :  { %4692 = vmatprep.subr.bf16.mxu0 %v5267_v3 }
 0xeeb   :  { %4693 = vmatpush3.bf16.msra.mxu0 %v5025_v11 }
 0xeec   :  { %2258 = vmatprep.subr.bf16.mxu0 %v5028_v13 }
 0xfa6   :  { %v1855_v24 = vpop.f32.mrf.mxu0 }
 0xfa7   :  { %v1866_v30 = vadd.f32 %v1865_v29, %v1855_v24  ;;  %v5035_v24 = vld [vmem:[%s6515_s1 + $0x540] ss:$8 sps:$4 sm:$0xff]   ;;  %v5046_v29 = vld [vmem:[%s6515_s1 + $0x514] ss:$8 sps:$4 sm:$0xff]  }
 0xfa8   :  { %v1857_v25 = vpop.f32.mrf.mxu0 }
 0xfa9   :  { %v1867_v26 = vpack.c.bf16 %v1857_v25, %v1857_v25  ;;  %v5040_v25 = vld [vmem:[%s6515_s1 + $0x534] ss:$8 sps:$4 sm:$0xff]  }
 0xfaa   :  { %v1859_v27 = vpop.f32.mrf.mxu0 }
 0xfab   :  { %4687 = vmatmul.mubr.msk.bf16.vlgmr.msra.gmra.mxu1 %vm181_vm1, %v1867_v26  ;;  %v5038_v26 = vld [vmem:[%s6515_s1 + $0x530] ss:$8 sps:$4 sm:$0xff]   ;;  %v5043_v27 = vld [vmem:[%s6515_s1 + $0x524] ss:$8 sps:$4 sm:$0xff]  }
 0xfac   :  { %v1860_v28 = vpop.f32.mrf.mxu0  ;;  %2083 = vmatprep.mubr.bf16.mxu1 %v5266_v2  ;;  %2052 = vmatpush1.bf16.msra.mxu1 %v5000_v39 }
 0xfad   :  { %2053 = vmatprep.subr.bf16.mxu1 %v5005_v42  ;;  %v5041_v28 = vld [vmem:[%s6515_s1 + $0x520] ss:$8 sps:$4 sm:$0xff]  }
0x106b   :  { %v1922_v31 = vpop.f32.mrf.mxu1 }
0x106c   :  { %v1928_v32 = vadd.f32 %v1922_v31, %v1866_v30  ;;  %v5044_v30 = vld [vmem:[%s6515_s1 + $0x510] ss:$8 sps:$4 sm:$0xff]   ;;  %v5049_v31 = vld [vmem:[%s6515_s1 + $0x504] ss:$8 sps:$4 sm:$0xff]  }
0x106d   :  { %v4688_v33 = vpop.f32.mrf.mxu1 }
0x106e   :  { %v1929_v34 = vadd.f32 %v1928_v32, %v5772_v12  ;;  %v5003_v12 = vld [vmem:[%s6515_s1 + $0x4e0] ss:$8 sps:$4 sm:$0xff]  }
0x106f   :  { %v1925_v36 = vpop.f32.mrf.mxu1  ;;  %2054 = vmatpush1.bf16.msra.mxu1 %v5003_v12  ;;  %v5047_v32 = vld [vmem:[%s6515_s1 + $0x500] ss:$8 sps:$4 sm:$0xff]  }
0x1070   :  { %1930 = vadd.xlane.f32.xlu0 %v1929_v34  ;;  %2055 = vmatprep.subr.bf16.mxu1 %v5008_v49  ;;  %v5050_v33 = vld [vmem:[%s6516_s2 + $0xa8] sm:$0xff]   ;;  %v5054_v49 = vld [vmem:[%s6515_s1 + $0x5f4] ss:$8 sps:$4 sm:$0xff]  }
0x1071   :  { %v4689_v37 = vpop.f32.mrf.mxu1 }
0x1073   :  { %2056 = vmatpush1.bf16.msra.mxu1 %v5006_v19 }
0x1074   :  { %2057 = vmatprep.subr.bf16.mxu1 %v5011_v51  ;;  %v5052_v51 = vld [vmem:[%s6515_s1 + $0x5f0] ss:$8 sps:$4 sm:$0xff]  }
0x1077   :  { %2058 = vmatpush1.bf16.msra.mxu1 %v5009_v50 }
0x1078   :  { %2059 = vmatprep.subr.bf16.mxu1 %v5014_v52 }
0x107b   :  { %2060 = vmatpush1.bf16.msra.mxu1 %v5012_v53  ;;  %v5057_v53 = vld [vmem:[%s6515_s1 + $0x5e4] ss:$8 sps:$4 sm:$0xff]  }
0x107c   :  { %2061 = vmatprep.subr.bf16.mxu1 %v5017_v54 }
0x107f   :  { %2062 = vmatpush1.bf16.msra.mxu1 %v5015_v55 }
0x1080   :  { %2063 = vmatprep.subr.bf16.mxu1 %v5020_v56  ;;  %v5055_v56 = vld [vmem:[%s6515_s1 + $0x5e0] ss:$8 sps:$4 sm:$0xff]  }
0x1083   :  { %2064 = vmatpush1.bf16.msra.mxu1 %v5018_v57  ;;  %v5060_v57 = vld [vmem:[%s6515_s1 + $0x5d4] ss:$8 sps:$4 sm:$0xff]  }
0x1084   :  { %2065 = vmatprep.subr.bf16.mxu1 %v5023_v58  ;;  %v5058_v58 = vld [vmem:[%s6515_s1 + $0x5d0] ss:$8 sps:$4 sm:$0xff]  }
0x1087   :  { %2066 = vmatpush1.bf16.msra.mxu1 %v5021_v59  ;;  %v5063_v59 = vld [vmem:[%s6515_s1 + $0x5c4] ss:$8 sps:$4 sm:$0xff]  }
0x1088   :  { %4698 = vmatprep.subr.bf16.mxu1 %v5267_v3 }
0x10f9   :  { %v1931_v43 = vpop.xlane.xlu0 %1930 }
0x10fa   :  { %v1932_v44 = vmul.f32 0.0078125, %v1931_v43 }
0x10fc   :  { %v1933_v15 = vsub.f32 %v1929_v34, %v1932_v44  ;;  %v6039_v34 = vld [vmem:[%s6517_s3 + $0x18] sm:$0xff] }
0x10fd   :  { %v2095_v36 = vrot.slane %v6039_v34, %v5422_v46  ;;  %v2302_v11 = vrot.slane %v6039_v34, %v5492_v18 }
0x10fe   :  { %v1934_v48 = vmul.f32 %v1933_v15, %v1933_v15 }
0x1100   :  { %1935 = vadd.xlane.f32.xlu1 %v1934_v48  ;;  %v5051_v48 = vld [vmem:[%s6516_s2 + $0xa0] sm:$0xff]  }
0x1189   :  { %v1936_v61 = vpop.xlane.xlu1 %1935 }
0x118a   :  { %v1937_v62 = vmul.f32 0.0078125, %v1936_v61  ;;  %v5066_v61 = vld [vmem:[%s6515_s1 + $0x5b4] ss:$8 sps:$4 sm:$0xff]  }
0x118c   :  { %v1938_v63 = vadd.f32 1e-05, %v1937_v62  ;;  %v5064_v62 = vld [vmem:[%s6515_s1 + $0x5b0] ss:$8 sps:$4 sm:$0xff]  }
0x118e   :  { %5238 = vrsqrt.f32 %v1938_v63  ;;  %v5069_v63 = vld [vmem:[%s6515_s1 + $0x5a4] ss:$8 sps:$4 sm:$0xff]  }
0x119b   :  { %v5239_v1 = vpop.eup %5238 }
0x119c   :  { %v1940_v4 = vmul.f32 %v5239_v1, %v1933_v15  ;;  %v5072_v1 = vld [vmem:[%s6515_s1 + $0x594] ss:$8 sps:$4 sm:$0xff]  }
0x119e   :  { %v1945_v6 = vmul.f32 %v1944_v0, %v1940_v4  ;;  %v5067_v0 = vld [vmem:[%s6515_s1 + $0x5a0] ss:$8 sps:$4 sm:$0xff]   ;;  %v5070_v4 = vld [vmem:[%s6515_s1 + $0x590] ss:$8 sps:$4 sm:$0xff]  }
0x11a0   :  { %v5972_v7 = vadd.f32 %v1949_v5, %v1945_v6  ;;  %v5075_v5 = vld [vmem:[%s6515_s1 + $0x584] ss:$8 sps:$4 sm:$0xff]   ;;  %v5073_v6 = vld [vmem:[%s6515_s1 + $0x580] ss:$8 sps:$4 sm:$0xff]  }
0x11a2   :  { %v1953_v10 = vpack.c.bf16 %v5972_v7, %v5972_v7 }
0x11a4   :  { %2084 = vmatmul.mubr.bf16.vlgmr.msra.gmra.mxu1 %v1953_v10  ;;  %v5076_v10 = vld [vmem:[%s6516_s2 + $0xb8] sm:$0xff]  }
0x11a5   :  { %4702 = vmatprep.mubr.msk.bf16.mxu1 %vm5268_vm0, %v5267_v3  ;;  %4699 = vmatpush3.bf16.msra.mxu1 %v5050_v33 }
0x11a6   :  { %4700 = vmatprep.subr.bf16.mxu1 %v5267_v3 }
0x11a9   :  { %4701 = vmatpush3.bf16.msra.mxu1 %v5051_v48  ;;  %v5087_v48 = vld [vmem:[%s6515_s1 + $0x640] ss:$8 sps:$4 sm:$0xff]  }
0x11aa   :  { %2465 = vmatprep.subr.bf16.mxu1 %v5054_v49  ;;  %v5089_v49 = vld [vmem:[%s6515_s1 + $0x644] ss:$8 sps:$4 sm:$0xff]  }
0x1264   :  { %v2085_v38 = vpop.f32.mrf.mxu1 }
0x1265   :  { %v2096_v37 = vadd.f32 %v2095_v36, %v2085_v38  ;;  %v5078_v36 = vld [vmem:[%s6515_s1 + $0x670] ss:$8 sps:$4 sm:$0xff]  }
0x1266   :  { %v2087_v14 = vpop.f32.mrf.mxu1 }
0x1267   :  { %v2097_v41 = vpack.c.bf16 %v2087_v14, %v2087_v14 }
0x1268   :  { %v2089_v17 = vpop.f32.mrf.mxu1 }
0x1269   :  { %4695 = vmatmul.mubr.msk.bf16.vlgmr.msra.gmra.mxu0 %vm181_vm1, %v2097_v41 }
0x126a   :  { %v2090_v47 = vpop.f32.mrf.mxu1  ;;  %2259 = vmatpush1.bf16.msra.mxu0 %v5026_v16  ;;  %2290 = vmatprep.mubr.bf16.mxu0 %v5266_v2 }
0x126b   :  { %2260 = vmatprep.subr.bf16.mxu0 %v5031_v45 }
0x126e   :  { %2261 = vmatpush1.bf16.msra.mxu0 %v5029_v20  ;;  %v5077_v20 = vld [vmem:[%s6516_s2 + $0xb0] sm:$0xff]  }
0x126f   :  { %2262 = vmatprep.subr.bf16.mxu0 %v5034_v21 }
0x1272   :  { %2263 = vmatpush1.bf16.msra.mxu0 %v5032_v22 }
0x1273   :  { %2264 = vmatprep.subr.bf16.mxu0 %v5037_v23 }
0x1276   :  { %2265 = vmatpush1.bf16.msra.mxu0 %v5035_v24 }
0x1277   :  { %2266 = vmatprep.subr.bf16.mxu0 %v5040_v25 }
0x127a   :  { %2267 = vmatpush1.bf16.msra.mxu0 %v5038_v26  ;;  %v2509_v26 = vrot.slane %v6039_v34, %v5504_v35 }
0x127b   :  { %2268 = vmatprep.subr.bf16.mxu0 %v5043_v27 }
0x127e   :  { %2269 = vmatpush1.bf16.msra.mxu0 %v5041_v28 }
0x127f   :  { %2270 = vmatprep.subr.bf16.mxu0 %v5046_v29 }
0x1282   :  { %2271 = vmatpush1.bf16.msra.mxu0 %v5044_v30 }
0x1283   :  { %2272 = vmatprep.subr.bf16.mxu0 %v5049_v31 }
0x1286   :  { %2273 = vmatpush1.bf16.msra.mxu0 %v5047_v32 }
0x1287   :  { %4706 = vmatprep.subr.bf16.mxu0 %v5267_v3 }
0x1329   :  { %v2152_v39 = vpop.f32.mrf.mxu0 }
0x132a   :  { %v2158_v40 = vadd.f32 %v2152_v39, %v2096_v37  ;;  %v5080_v37 = vld [vmem:[%s6515_s1 + $0x674] ss:$8 sps:$4 sm:$0xff]   ;;  %v5083_v39 = vld [vmem:[%s6515_s1 + $0x664] ss:$8 sps:$4 sm:$0xff]  }
0x132b   :  { %v4696_v42 = vpop.f32.mrf.mxu0 }
0x132c   :  { %v2159_v12 = vmax.f32 %v2158_v40, 0.0 }
0x132d   :  { %v2155_v43 = vpop.f32.mrf.mxu0 }
0x132e   :  { %v2160_v44 = vpack.c.bf16 %v2159_v12, %v2159_v12 }
0x132f   :  { %v4697_v15 = vpop.f32.mrf.mxu0 }
0x1330   :  { %2291 = vmatmul.mubr.bf16.vlgmr.msra.gmra.mxu0 %v2160_v44  ;;  %v5086_v44 = vld [vmem:[%s6515_s1 + $0x654] ss:$8 sps:$4 sm:$0xff]   ;;  %v5084_v15 = vld [vmem:[%s6515_s1 + $0x650] ss:$8 sps:$4 sm:$0xff]  }
0x1331   :  { %4710 = vmatprep.mubr.msk.bf16.mxu0 %vm5268_vm0, %v5267_v3  ;;  %4707 = vmatpush3.bf16.msra.mxu0 %v5076_v10  ;;  %v5106_v10 = vld [vmem:[%s6515_s1 + $0x6f4] ss:$8 sps:$4 sm:$0xff]  }
0x1332   :  { %4708 = vmatprep.subr.bf16.mxu0 %v5267_v3 }
0x1335   :  { %4709 = vmatpush3.bf16.msra.mxu0 %v5077_v20  ;;  %v5115_v20 = vld [vmem:[%s6515_s1 + $0x6c4] ss:$8 sps:$4 sm:$0xff]  }
0x1336   :  { %2695 = vmatprep.subr.bf16.mxu0 %v5080_v37 }
0x13f0   :  { %v2292_v19 = vpop.f32.mrf.mxu0 }
0x13f1   :  { %v2303_v13 = vadd.f32 %v2302_v11, %v2292_v19  ;;  %v5092_v19 = vld [vmem:[%s6515_s1 + $0x634] ss:$8 sps:$4 sm:$0xff]  }
0x13f2   :  { %v2294_v50 = vpop.f32.mrf.mxu0 }
0x13f3   :  { %v2304_v52 = vpack.c.bf16 %v2294_v50, %v2294_v50  ;;  %v5090_v50 = vld [vmem:[%s6515_s1 + $0x630] ss:$8 sps:$4 sm:$0xff]  }
0x13f4   :  { %v2296_v54 = vpop.f32.mrf.mxu0 }
0x13f5   :  { %4703 = vmatmul.mubr.msk.bf16.vlgmr.msra.gmra.mxu1 %vm181_vm1, %v2304_v52  ;;  %v5093_v52 = vld [vmem:[%s6515_s1 + $0x620] ss:$8 sps:$4 sm:$0xff]   ;;  %v5096_v54 = vld [vmem:[%s6515_s1 + $0x610] ss:$8 sps:$4 sm:$0xff]  }
0x13f6   :  { %v2297_v55 = vpop.f32.mrf.mxu0  ;;  %2466 = vmatpush1.bf16.msra.mxu1 %v5052_v51  ;;  %2497 = vmatprep.mubr.bf16.mxu1 %v5266_v2  ;;  %v5095_v51 = vld [vmem:[%s6515_s1 + $0x624] ss:$8 sps:$4 sm:$0xff]  }
0x13f7   :  { %2467 = vmatprep.subr.bf16.mxu1 %v5057_v53  ;;  %v5098_v53 = vld [vmem:[%s6515_s1 + $0x614] ss:$8 sps:$4 sm:$0xff]   ;;  %v5101_v55 = vld [vmem:[%s6515_s1 + $0x604] ss:$8 sps:$4 sm:$0xff]  }
0x13fa   :  { %2468 = vmatpush1.bf16.msra.mxu1 %v5055_v56  ;;  %v5099_v56 = vld [vmem:[%s6515_s1 + $0x600] ss:$8 sps:$4 sm:$0xff]  }
0x13fb   :  { %2469 = vmatprep.subr.bf16.mxu1 %v5060_v57  ;;  %v5102_v57 = vld [vmem:[%s6516_s2 + $0xc8] sm:$0xff]  }
0x13fe   :  { %2470 = vmatpush1.bf16.msra.mxu1 %v5058_v58 }
0x13ff   :  { %2471 = vmatprep.subr.bf16.mxu1 %v5063_v59 }
0x1402   :  { %2472 = vmatpush1.bf16.msra.mxu1 %v5061_v60 }
0x1403   :  { %2473 = vmatprep.subr.bf16.mxu1 %v5066_v61  ;;  %v2588_v61 = vrot.slane %v6039_v34, %v5563_v8 }
0x1406   :  { %2474 = vmatpush1.bf16.msra.mxu1 %v5064_v62 }
0x1407   :  { %2475 = vmatprep.subr.bf16.mxu1 %v5069_v63 }
0x140a   :  { %2476 = vmatpush1.bf16.msra.mxu1 %v5067_v0  ;;  %v2593_v0 = vrot.slane %v6039_v34, %v5566_v9 }
0x140b   :  { %2477 = vmatprep.subr.bf16.mxu1 %v5072_v1 }
0x140e   :  { %2478 = vmatpush1.bf16.msra.mxu1 %v5070_v4 }
0x140f   :  { %2479 = vmatprep.subr.bf16.mxu1 %v5075_v5 }
0x1412   :  { %2480 = vmatpush1.bf16.msra.mxu1 %v5073_v6  ;;  %v5103_v6 = vld [vmem:[%s6516_s2 + $0xc0] sm:$0xff]  }
0x1413   :  { %4714 = vmatprep.subr.bf16.mxu1 %v5267_v3 }
0x14b5   :  { %v2359_v38 = vpop.f32.mrf.mxu1 }
0x14b6   :  { %v2365_v14 = vadd.f32 %v2359_v38, %v2303_v13  ;;  %v5104_v13 = vld [vmem:[%s6515_s1 + $0x6f0] ss:$8 sps:$4 sm:$0xff]  }
0x14b7   :  { %v4704_v16 = vpop.f32.mrf.mxu1 }
0x14b8   :  { %v2366_v41 = vmax.f32 %v2365_v14, 0.0  ;;  %v5109_v14 = vld [vmem:[%s6515_s1 + $0x6e4] ss:$8 sps:$4 sm:$0xff]  }
0x14b9   :  { %v2362_v45 = vpop.f32.mrf.mxu1 }
0x14ba   :  { %v2367_v17 = vpack.c.bf16 %v2366_v41, %v2366_v41  ;;  %v5107_v45 = vld [vmem:[%s6515_s1 + $0x6e0] ss:$8 sps:$4 sm:$0xff]  }
0x14bb   :  { %v4705_v47 = vpop.f32.mrf.mxu1 }
0x14bc   :  { %2498 = vmatmul.mubr.bf16.vlgmr.msra.gmra.mxu1 %v2367_v17  ;;  %v5112_v17 = vld [vmem:[%s6515_s1 + $0x6d4] ss:$8 sps:$4 sm:$0xff]   ;;  %v5110_v47 = vld [vmem:[%s6515_s1 + $0x6d0] ss:$8 sps:$4 sm:$0xff]  }
0x14bd   :  { %4718 = vmatprep.mubr.msk.bf16.mxu1 %vm5268_vm0, %v5267_v3  ;;  %4715 = vmatpush3.bf16.msra.mxu1 %v5102_v57  ;;  %v5139_v57 = vld [vmem:[%s6515_s1 + $0x740] ss:$8 sps:$4 sm:$0xff]  }
0x14be   :  { %4716 = vmatprep.subr.bf16.mxu1 %v5267_v3 }
0x14c1   :  { %4717 = vmatpush3.bf16.msra.mxu1 %v5103_v6 }
0x14c2   :  { %2902 = vmatprep.subr.bf16.mxu1 %v5106_v10 }
0x157c   :  { %v2499_v21 = vpop.f32.mrf.mxu1 }
0x157d   :  { %v2510_v27 = vadd.f32 %v2509_v26, %v2499_v21  ;;  %v5113_v21 = vld [vmem:[%s6515_s1 + $0x6c0] ss:$8 sps:$4 sm:$0xff]   ;;  %v5124_v26 = vld [vmem:[%s6515_s1 + $0x694] ss:$8 sps:$4 sm:$0xff]  }
0x157e   :  { %v2501_v22 = vpop.f32.mrf.mxu1 }
0x157f   :  { %v2511_v23 = vpack.c.bf16 %v2501_v22, %v2501_v22  ;;  %v5118_v22 = vld [vmem:[%s6515_s1 + $0x6b4] ss:$8 sps:$4 sm:$0xff]  }
0x1580   :  { %v2503_v24 = vpop.f32.mrf.mxu1 }
0x1581   :  { %4711 = vmatmul.mubr.msk.bf16.vlgmr.msra.gmra.mxu0 %vm181_vm1, %v2511_v23  ;;  %v5116_v23 = vld [vmem:[%s6515_s1 + $0x6b0] ss:$8 sps:$4 sm:$0xff]   ;;  %v5121_v24 = vld [vmem:[%s6515_s1 + $0x6a4] ss:$8 sps:$4 sm:$0xff]  }
0x1582   :  { %v2504_v25 = vpop.f32.mrf.mxu1  ;;  %2727 = vmatprep.mubr.bf16.mxu0 %v5266_v2  ;;  %2696 = vmatpush1.bf16.msra.mxu0 %v5078_v36 }
0x1583   :  { %2697 = vmatprep.subr.bf16.mxu0 %v5083_v39  ;;  %v5119_v25 = vld [vmem:[%s6515_s1 + $0x6a0] ss:$8 sps:$4 sm:$0xff]  }
0x1641   :  { %v2566_v28 = vpop.f32.mrf.mxu0 }
0x1642   :  { %v2572_v29 = vadd.f32 %v2566_v28, %v2510_v27  ;;  %v5122_v27 = vld [vmem:[%s6515_s1 + $0x690] ss:$8 sps:$4 sm:$0xff]   ;;  %v5127_v28 = vld [vmem:[%s6515_s1 + $0x684] ss:$8 sps:$4 sm:$0xff]  }
0x1643   :  { %v4712_v30 = vpop.f32.mrf.mxu0 }
0x1644   :  { %v2573_v31 = vadd.f32 %v2572_v29, %v5972_v7  ;;  %v5081_v7 = vld [vmem:[%s6515_s1 + $0x660] ss:$8 sps:$4 sm:$0xff]   ;;  %v5128_v30 = vld [vmem:[%s6516_s2 + $0xd8] sm:$0xff]  }
0x1645   :  { %v2569_v32 = vpop.f32.mrf.mxu0  ;;  %2698 = vmatpush1.bf16.msra.mxu0 %v5081_v7  ;;  %v5125_v29 = vld [vmem:[%s6515_s1 + $0x680] ss:$8 sps:$4 sm:$0xff]  }
0x1646   :  { %2574 = vadd.xlane.f32.xlu0 %v2573_v31  ;;  %2699 = vmatprep.subr.bf16.mxu0 %v5086_v44  ;;  %v5132_v44 = vld [vmem:[%s6515_s1 + $0x774] ss:$8 sps:$4 sm:$0xff]  }
0x1647   :  { %v4713_v33 = vpop.f32.mrf.mxu0 }
0x1649   :  { %2700 = vmatpush1.bf16.msra.mxu0 %v5084_v15 }
0x164a   :  { %2701 = vmatprep.subr.bf16.mxu0 %v5089_v49  ;;  %v5130_v49 = vld [vmem:[%s6515_s1 + $0x770] ss:$8 sps:$4 sm:$0xff]  }
0x164d   :  { %2702 = vmatpush1.bf16.msra.mxu0 %v5087_v48 }
0x164e   :  { %2703 = vmatprep.subr.bf16.mxu0 %v5092_v19 }
0x1651   :  { %2704 = vmatpush1.bf16.msra.mxu0 %v5090_v50  ;;  %v5135_v50 = vld [vmem:[%s6515_s1 + $0x764] ss:$8 sps:$4 sm:$0xff]  }
0x1652   :  { %2705 = vmatprep.subr.bf16.mxu0 %v5095_v51 }
0x1655   :  { %2706 = vmatpush1.bf16.msra.mxu0 %v5093_v52 }
0x1656   :  { %2707 = vmatprep.subr.bf16.mxu0 %v5098_v53  ;;  %v5133_v53 = vld [vmem:[%s6515_s1 + $0x760] ss:$8 sps:$4 sm:$0xff]  }
0x1659   :  { %2708 = vmatpush1.bf16.msra.mxu0 %v5096_v54  ;;  %v5138_v54 = vld [vmem:[%s6515_s1 + $0x754] ss:$8 sps:$4 sm:$0xff]  }
0x165a   :  { %2709 = vmatprep.subr.bf16.mxu0 %v5101_v55  ;;  %v5136_v55 = vld [vmem:[%s6515_s1 + $0x750] ss:$8 sps:$4 sm:$0xff]  }
0x165d   :  { %2710 = vmatpush1.bf16.msra.mxu0 %v5099_v56  ;;  %v5141_v56 = vld [vmem:[%s6515_s1 + $0x744] ss:$8 sps:$4 sm:$0xff]  }
0x165e   :  { %4722 = vmatprep.subr.bf16.mxu0 %v5267_v3 }
0x16cf   :  { %v2575_v40 = vpop.xlane.xlu0 %2574 }
0x16d0   :  { %v2576_v42 = vmul.f32 0.0078125, %v2575_v40 }
0x16d2   :  { %v2577_v12 = vsub.f32 %v2573_v31, %v2576_v42  ;;  %v6239_v31 = vld [vmem:[%s6517_s3 + $0x20] sm:$0xff] }
0x16d3   :  { %v2739_v32 = vrot.slane %v6239_v31, %v5422_v46  ;;  %v2946_v6 = vrot.slane %v6239_v31, %v5492_v18 }
0x16d4   :  { %v2578_v43 = vmul.f32 %v2577_v12, %v2577_v12 }
0x16d6   :  { %2579 = vadd.xlane.f32.xlu1 %v2578_v43  ;;  %v5129_v43 = vld [vmem:[%s6516_s2 + $0xd0] sm:$0xff]  }
0x175f   :  { %v2580_v58 = vpop.xlane.xlu1 %2579 }
0x1760   :  { %v2581_v59 = vmul.f32 0.0078125, %v2580_v58  ;;  %v5144_v58 = vld [vmem:[%s6515_s1 + $0x734] ss:$8 sps:$4 sm:$0xff]  }
0x1762   :  { %v2582_v60 = vadd.f32 1e-05, %v2581_v59  ;;  %v5142_v59 = vld [vmem:[%s6515_s1 + $0x730] ss:$8 sps:$4 sm:$0xff]  }
0x1764   :  { %5240 = vrsqrt.f32 %v2582_v60  ;;  %v5147_v60 = vld [vmem:[%s6515_s1 + $0x724] ss:$8 sps:$4 sm:$0xff]  }
0x1771   :  { %v5241_v62 = vpop.eup %5240 }
0x1772   :  { %v2584_v63 = vmul.f32 %v5241_v62, %v2577_v12  ;;  %v5150_v62 = vld [vmem:[%s6515_s1 + $0x714] ss:$8 sps:$4 sm:$0xff]  }
0x1774   :  { %v2589_v1 = vmul.f32 %v2588_v61, %v2584_v63  ;;  %v5145_v61 = vld [vmem:[%s6515_s1 + $0x720] ss:$8 sps:$4 sm:$0xff]   ;;  %v5148_v63 = vld [vmem:[%s6515_s1 + $0x710] ss:$8 sps:$4 sm:$0xff]  }
0x1776   :  { %v6172_v4 = vadd.f32 %v2593_v0, %v2589_v1  ;;  %v5153_v0 = vld [vmem:[%s6515_s1 + $0x704] ss:$8 sps:$4 sm:$0xff]   ;;  %v5151_v1 = vld [vmem:[%s6515_s1 + $0x700] ss:$8 sps:$4 sm:$0xff]  }
0x1778   :  { %v2597_v5 = vpack.c.bf16 %v6172_v4, %v6172_v4 }
0x177a   :  { %2728 = vmatmul.mubr.bf16.vlgmr.msra.gmra.mxu0 %v2597_v5  ;;  %v5154_v5 = vld [vmem:[%s6516_s2 + $0xe8] sm:$0xff]  }
0x177b   :  { %4726 = vmatprep.mubr.msk.bf16.mxu0 %vm5268_vm0, %v5267_v3  ;;  %4723 = vmatpush3.bf16.msra.mxu0 %v5128_v30 }
0x177c   :  { %4724 = vmatprep.subr.bf16.mxu0 %v5267_v3 }
0x177f   :  { %4725 = vmatpush3.bf16.msra.mxu0 %v5129_v43  ;;  %v5165_v43 = vld [vmem:[%s6515_s1 + $0x7c0] ss:$8 sps:$4 sm:$0xff]  }
0x1780   :  { %3109 = vmatprep.subr.bf16.mxu0 %v5132_v44  ;;  %v5167_v44 = vld [vmem:[%s6515_s1 + $0x7c4] ss:$8 sps:$4 sm:$0xff]  }
0x183a   :  { %v2729_v34 = vpop.f32.mrf.mxu0 }
0x183b   :  { %v2740_v33 = vadd.f32 %v2739_v32, %v2729_v34  ;;  %v5156_v32 = vld [vmem:[%s6515_s1 + $0x7f0] ss:$8 sps:$4 sm:$0xff]  }
0x183c   :  { %v2731_v11 = vpop.f32.mrf.mxu0 }
0x183d   :  { %v2741_v38 = vpack.c.bf16 %v2731_v11, %v2731_v11 }
0x183e   :  { %v2733_v16 = vpop.f32.mrf.mxu0 }
0x183f   :  { %4719 = vmatmul.mubr.msk.bf16.vlgmr.msra.gmra.mxu1 %vm181_vm1, %v2741_v38 }
0x1840   :  { %v2734_v41 = vpop.f32.mrf.mxu0  ;;  %2903 = vmatpush1.bf16.msra.mxu1 %v5104_v13  ;;  %2934 = vmatprep.mubr.bf16.mxu1 %v5266_v2 }
0x1841   :  { %2904 = vmatprep.subr.bf16.mxu1 %v5109_v14 }
0x1844   :  { %2905 = vmatpush1.bf16.msra.mxu1 %v5107_v45  ;;  %v5155_v45 = vld [vmem:[%s6516_s2 + $0xe0] sm:$0xff]  }
0x1845   :  { %2906 = vmatprep.subr.bf16.mxu1 %v5112_v17 }
0x1848   :  { %2907 = vmatpush1.bf16.msra.mxu1 %v5110_v47 }
0x1849   :  { %2908 = vmatprep.subr.bf16.mxu1 %v5115_v20 }
0x184c   :  { %2909 = vmatpush1.bf16.msra.mxu1 %v5113_v21 }
0x184d   :  { %2910 = vmatprep.subr.bf16.mxu1 %v5118_v22 }
0x1850   :  { %2911 = vmatpush1.bf16.msra.mxu1 %v5116_v23  ;;  %v3153_v23 = vrot.slane %v6239_v31, %v5504_v35 }
0x1851   :  { %2912 = vmatprep.subr.bf16.mxu1 %v5121_v24 }
0x1854   :  { %2913 = vmatpush1.bf16.msra.mxu1 %v5119_v25 }
0x1855   :  { %2914 = vmatprep.subr.bf16.mxu1 %v5124_v26 }
0x1858   :  { %2915 = vmatpush1.bf16.msra.mxu1 %v5122_v27 }
0x1859   :  { %2916 = vmatprep.subr.bf16.mxu1 %v5127_v28 }
0x185c   :  { %2917 = vmatpush1.bf16.msra.mxu1 %v5125_v29 }
0x185d   :  { %4730 = vmatprep.subr.bf16.mxu1 %v5267_v3 }
0x18ff   :  { %v2796_v36 = vpop.f32.mrf.mxu1 }
0x1900   :  { %v2802_v37 = vadd.f32 %v2796_v36, %v2740_v33  ;;  %v5158_v33 = vld [vmem:[%s6515_s1 + $0x7f4] ss:$8 sps:$4 sm:$0xff]   ;;  %v5161_v36 = vld [vmem:[%s6515_s1 + $0x7e4] ss:$8 sps:$4 sm:$0xff]  }
0x1901   :  { %v4720_v39 = vpop.f32.mrf.mxu1 }
0x1902   :  { %v2803_v7 = vmax.f32 %v2802_v37, 0.0 }
0x1903   :  { %v2799_v40 = vpop.f32.mrf.mxu1 }
0x1904   :  { %v2804_v42 = vpack.c.bf16 %v2803_v7, %v2803_v7 }
0x1905   :  { %v4721_v12 = vpop.f32.mrf.mxu1 }
0x1906   :  { %2935 = vmatmul.mubr.bf16.vlgmr.msra.gmra.mxu1 %v2804_v42  ;;  %v5164_v42 = vld [vmem:[%s6515_s1 + $0x7d4] ss:$8 sps:$4 sm:$0xff]   ;;  %v5162_v12 = vld [vmem:[%s6515_s1 + $0x7d0] ss:$8 sps:$4 sm:$0xff]  }
0x1907   :  { %4734 = vmatprep.mubr.msk.bf16.mxu1 %vm5268_vm0, %v5267_v3  ;;  %4731 = vmatpush3.bf16.msra.mxu1 %v5154_v5  ;;  %v5182_v5 = vld [vmem:[%s6515_s1 + $0x870] ss:$8 sps:$4 sm:$0xff]  }
0x1908   :  { %4732 = vmatprep.subr.bf16.mxu1 %v5267_v3 }
0x190b   :  { %4733 = vmatpush3.bf16.msra.mxu1 %v5155_v45  ;;  %v5196_v45 = vld [vmem:[%s6515_s1 + $0x834] ss:$8 sps:$4 sm:$0xff]  }
0x190c   :  { %3339 = vmatprep.subr.bf16.mxu1 %v5158_v33 }
0x19c6   :  { %v2936_v15 = vpop.f32.mrf.mxu1 }
0x19c7   :  { %v2947_v10 = vadd.f32 %v2946_v6, %v2936_v15  ;;  %v5170_v15 = vld [vmem:[%s6515_s1 + $0x7b4] ss:$8 sps:$4 sm:$0xff]  }
0x19c8   :  { %v2938_v48 = vpop.f32.mrf.mxu1 }
0x19c9   :  { %v2948_v19 = vpack.c.bf16 %v2938_v48, %v2938_v48  ;;  %v5168_v48 = vld [vmem:[%s6515_s1 + $0x7b0] ss:$8 sps:$4 sm:$0xff]  }
0x19ca   :  { %v2940_v51 = vpop.f32.mrf.mxu1 }
0x19cb   :  { %4727 = vmatmul.mubr.msk.bf16.vlgmr.msra.gmra.mxu0 %vm181_vm1, %v2948_v19  ;;  %v5171_v19 = vld [vmem:[%s6515_s1 + $0x7a0] ss:$8 sps:$4 sm:$0xff]   ;;  %v5174_v51 = vld [vmem:[%s6515_s1 + $0x790] ss:$8 sps:$4 sm:$0xff]  }
0x19cc   :  { %v2941_v52 = vpop.f32.mrf.mxu1  ;;  %3110 = vmatpush1.bf16.msra.mxu0 %v5130_v49  ;;  %3141 = vmatprep.mubr.bf16.mxu0 %v5266_v2  ;;  %v5173_v49 = vld [vmem:[%s6515_s1 + $0x7a4] ss:$8 sps:$4 sm:$0xff]  }
0x19cd   :  { %3111 = vmatprep.subr.bf16.mxu0 %v5135_v50  ;;  %v5176_v50 = vld [vmem:[%s6515_s1 + $0x794] ss:$8 sps:$4 sm:$0xff]   ;;  %v5179_v52 = vld [vmem:[%s6515_s1 + $0x784] ss:$8 sps:$4 sm:$0xff]  }
0x19d0   :  { %3112 = vmatpush1.bf16.msra.mxu0 %v5133_v53  ;;  %v5177_v53 = vld [vmem:[%s6515_s1 + $0x780] ss:$8 sps:$4 sm:$0xff]  }
0x19d1   :  { %3113 = vmatprep.subr.bf16.mxu0 %v5138_v54  ;;  %v5180_v54 = vld [vmem:[%s6516_s2 + $0xf8] sm:$0xff]  }
0x19d4   :  { %3114 = vmatpush1.bf16.msra.mxu0 %v5136_v55 }
0x19d5   :  { %3115 = vmatprep.subr.bf16.mxu0 %v5141_v56 }
0x19d8   :  { %3116 = vmatpush1.bf16.msra.mxu0 %v5139_v57 }
0x19d9   :  { %3117 = vmatprep.subr.bf16.mxu0 %v5144_v58  ;;  %v3232_v58 = vrot.slane %v6239_v31, %v5563_v8  ;;  %v5184_v8 = vld [vmem:[%s6515_s1 + $0x874] ss:$8 sps:$4 sm:$0xff]  }
0x19dc   :  { %3118 = vmatpush1.bf16.msra.mxu0 %v5142_v59 }
0x19dd   :  { %3119 = vmatprep.subr.bf16.mxu0 %v5147_v60 }
0x19e0   :  { %3120 = vmatpush1.bf16.msra.mxu0 %v5145_v61  ;;  %v3237_v61 = vrot.slane %v6239_v31, %v5566_v9 }
0x19e1   :  { %3121 = vmatprep.subr.bf16.mxu0 %v5150_v62 }
0x19e4   :  { %3122 = vmatpush1.bf16.msra.mxu0 %v5148_v63 }
0x19e5   :  { %3123 = vmatprep.subr.bf16.mxu0 %v5153_v0 }
0x19e8   :  { %3124 = vmatpush1.bf16.msra.mxu0 %v5151_v1  ;;  %v5181_v1 = vld [vmem:[%s6516_s2 + $0xf0] sm:$0xff]  }
0x19e9   :  { %4738 = vmatprep.subr.bf16.mxu0 %v5267_v3 }
0x1a8b   :  { %v3003_v34 = vpop.f32.mrf.mxu0 }
0x1a8c   :  { %v3009_v11 = vadd.f32 %v3003_v34, %v2947_v10  ;;  %v5187_v10 = vld [vmem:[%s6515_s1 + $0x864] ss:$8 sps:$4 sm:$0xff]  }
0x1a8d   :  { %v4728_v13 = vpop.f32.mrf.mxu0 }
0x1a8e   :  { %v3010_v38 = vmax.f32 %v3009_v11, 0.0  ;;  %v5185_v13 = vld [vmem:[%s6515_s1 + $0x860] ss:$8 sps:$4 sm:$0xff]  }
0x1a8f   :  { %v3006_v14 = vpop.f32.mrf.mxu0 }
0x1a90   :  { %v3011_v16 = vpack.c.bf16 %v3010_v38, %v3010_v38  ;;  %v5190_v38 = vld [vmem:[%s6515_s1 + $0x854] ss:$8 sps:$4 sm:$0xff]   ;;  %v5188_v14 = vld [vmem:[%s6515_s1 + $0x850] ss:$8 sps:$4 sm:$0xff]  }
0x1a91   :  { %v4729_v41 = vpop.f32.mrf.mxu0 }
0x1a92   :  { %3142 = vmatmul.mubr.bf16.vlgmr.msra.gmra.mxu0 %v3011_v16  ;;  %v5193_v16 = vld [vmem:[%s6515_s1 + $0x844] ss:$8 sps:$4 sm:$0xff]   ;;  %v5191_v41 = vld [vmem:[%s6515_s1 + $0x840] ss:$8 sps:$4 sm:$0xff]  }
0x1a93   :  { %4742 = vmatprep.mubr.msk.bf16.mxu0 %vm5268_vm0, %v5267_v3  ;;  %4739 = vmatpush3.bf16.msra.mxu0 %v5180_v54  ;;  %v5223_v54 = vld [vmem:[%s6515_s1 + $0x8a0] ss:$8 sps:$4 sm:$0xff]  }
0x1a94   :  { %4740 = vmatprep.subr.bf16.mxu0 %v5267_v3 }
0x1a97   :  { %4741 = vmatpush3.bf16.msra.mxu0 %v5181_v1 }
0x1a98   :  { %3546 = vmatprep.subr.bf16.mxu0 %v5184_v8 }
0x1b52   :  { %v3143_v17 = vpop.f32.mrf.mxu0 }
0x1b53   :  { %v3154_v24 = vadd.f32 %v3153_v23, %v3143_v17  ;;  %v5194_v17 = vld [vmem:[%s6515_s1 + $0x830] ss:$8 sps:$4 sm:$0xff]   ;;  %v5205_v23 = vld [vmem:[%s6515_s1 + $0x804] ss:$8 sps:$4 sm:$0xff]  }
0x1b54   :  { %v3145_v47 = vpop.f32.mrf.mxu0 }
0x1b55   :  { %v3155_v20 = vpack.c.bf16 %v3145_v47, %v3145_v47  ;;  %v5199_v47 = vld [vmem:[%s6515_s1 + $0x824] ss:$8 sps:$4 sm:$0xff]  }
0x1b56   :  { %v3147_v21 = vpop.f32.mrf.mxu0 }
0x1b57   :  { %4735 = vmatmul.mubr.msk.bf16.vlgmr.msra.gmra.mxu1 %vm181_vm1, %v3155_v20  ;;  %v5197_v20 = vld [vmem:[%s6515_s1 + $0x820] ss:$8 sps:$4 sm:$0xff]   ;;  %v5202_v21 = vld [vmem:[%s6515_s1 + $0x814] ss:$8 sps:$4 sm:$0xff]  }
0x1b58   :  { %v3148_v22 = vpop.f32.mrf.mxu0  ;;  %3371 = vmatprep.mubr.bf16.mxu1 %v5266_v2  ;;  %3340 = vmatpush1.bf16.msra.mxu1 %v5156_v32 }
0x1b59   :  { %3341 = vmatprep.subr.bf16.mxu1 %v5161_v36  ;;  %v5200_v22 = vld [vmem:[%s6515_s1 + $0x810] ss:$8 sps:$4 sm:$0xff]  }
0x1c17   :  { %v3210_v25 = vpop.f32.mrf.mxu1 }
0x1c18   :  { %v3216_v26 = vadd.f32 %v3210_v25, %v3154_v24  ;;  %v5203_v24 = vld [vmem:[%s6515_s1 + $0x800] ss:$8 sps:$4 sm:$0xff]  }
0x1c19   :  { %v4736_v27 = vpop.f32.mrf.mxu1  ;;  %v5206_v25 = vld [vmem:[%s6516_s2 + $0x108] sm:$0xff]  }
0x1c1a   :  { %v3217_v28 = vadd.f32 %v3216_v26, %v6172_v4  ;;  %v5159_v4 = vld [vmem:[%s6515_s1 + $0x7e0] ss:$8 sps:$4 sm:$0xff]  }
0x1c1b   :  { %v3213_v29 = vpop.f32.mrf.mxu1  ;;  %3342 = vmatpush1.bf16.msra.mxu1 %v5159_v4  ;;  %v6439_v26 = vld [vmem:[%s6517_s3 + $0x28] sm:$0xff] }
0x1c1c   :  { %3218 = vadd.xlane.f32.xlu0 %v3217_v28  ;;  %3343 = vmatprep.subr.bf16.mxu1 %v5164_v42  ;;  %v3383_v27 = vrot.slane %v6439_v26, %v5422_v46  ;;  %v5210_v46 = vld [vmem:[%s6515_s1 + $0x8f4] ss:$8 sps:$4 sm:$0xff]   ;;  %v5208_v42 = vld [vmem:[%s6515_s1 + $0x8f0] ss:$8 sps:$4 sm:$0xff]  }
0x1c1d   :  { %v4737_v30 = vpop.f32.mrf.mxu1 }
0x1c1f   :  { %3344 = vmatpush1.bf16.msra.mxu1 %v5162_v12 }
0x1c20   :  { %3345 = vmatprep.subr.bf16.mxu1 %v5167_v44 }
0x1c23   :  { %3346 = vmatpush1.bf16.msra.mxu1 %v5165_v43  ;;  %v5213_v43 = vld [vmem:[%s6515_s1 + $0x8e4] ss:$8 sps:$4 sm:$0xff]  }
0x1c24   :  { %3347 = vmatprep.subr.bf16.mxu1 %v5170_v15 }
0x1c27   :  { %3348 = vmatpush1.bf16.msra.mxu1 %v5168_v48  ;;  %v5211_v48 = vld [vmem:[%s6515_s1 + $0x8e0] ss:$8 sps:$4 sm:$0xff]  }
0x1c28   :  { %3349 = vmatprep.subr.bf16.mxu1 %v5173_v49  ;;  %v5216_v49 = vld [vmem:[%s6515_s1 + $0x8d4] ss:$8 sps:$4 sm:$0xff]  }
0x1c2b   :  { %3350 = vmatpush1.bf16.msra.mxu1 %v5171_v19  ;;  %v5214_v19 = vld [vmem:[%s6515_s1 + $0x8d0] ss:$8 sps:$4 sm:$0xff]  }
0x1c2c   :  { %3351 = vmatprep.subr.bf16.mxu1 %v5176_v50  ;;  %v5219_v50 = vld [vmem:[%s6515_s1 + $0x8c4] ss:$8 sps:$4 sm:$0xff]  }
0x1c2f   :  { %3352 = vmatpush1.bf16.msra.mxu1 %v5174_v51  ;;  %v5222_v51 = vld [vmem:[%s6515_s1 + $0x8b4] ss:$8 sps:$4 sm:$0xff]  }
0x1c30   :  { %3353 = vmatprep.subr.bf16.mxu1 %v5179_v52  ;;  %v5220_v52 = vld [vmem:[%s6515_s1 + $0x8b0] ss:$8 sps:$4 sm:$0xff]  }
0x1c33   :  { %3354 = vmatpush1.bf16.msra.mxu1 %v5177_v53  ;;  %v5225_v53 = vld [vmem:[%s6515_s1 + $0x8a4] ss:$8 sps:$4 sm:$0xff]  }
0x1c34   :  { %4746 = vmatprep.subr.bf16.mxu1 %v5267_v3 }
0x1ca5   :  { %v3219_v37 = vpop.xlane.xlu0 %3218 }
0x1ca6   :  { %v3220_v39 = vmul.f32 0.0078125, %v3219_v37 }
0x1ca8   :  { %v3221_v7 = vsub.f32 %v3217_v28, %v3220_v39  ;;  %v5207_v39 = vld [vmem:[%s6516_s2 + $0x100] sm:$0xff]  }
0x1caa   :  { %v3222_v40 = vmul.f32 %v3221_v7, %v3221_v7 }
0x1cac   :  { %3223 = vadd.xlane.f32.xlu1 %v3222_v40 }
0x1d35   :  { %v3224_v55 = vpop.xlane.xlu1 %3223 }
0x1d36   :  { %v3225_v56 = vmul.f32 0.0078125, %v3224_v55  ;;  %v5228_v55 = vld [vmem:[%s6515_s1 + $0x894] ss:$8 sps:$4 sm:$0xff]  }
0x1d38   :  { %v3226_v57 = vadd.f32 1e-05, %v3225_v56  ;;  %v5226_v56 = vld [vmem:[%s6515_s1 + $0x890] ss:$8 sps:$4 sm:$0xff]  }
0x1d3a   :  { %5242 = vrsqrt.f32 %v3226_v57  ;;  %v5231_v57 = vld [vmem:[%s6515_s1 + $0x884] ss:$8 sps:$4 sm:$0xff]  }
0x1d47   :  { %v5243_v59 = vpop.eup %5242 }
0x1d48   :  { %v3228_v60 = vmul.f32 %v5243_v59, %v3221_v7  ;;  %v5232_v59 = vld [vmem:[%s6516_s2 + $0x118] sm:$0xff]  }
0x1d4a   :  { %v3233_v62 = vmul.f32 %v3232_v58, %v3228_v60  ;;  %v5229_v58 = vld [vmem:[%s6515_s1 + $0x880] ss:$8 sps:$4 sm:$0xff]   ;;  %v3590_v60 = vrot.slane %v6439_v26, %v5492_v18 }
0x1d4c   :  { %v6372_v63 = vadd.f32 %v3237_v61, %v3233_v62 }
0x1d4e   :  { %v3241_v0 = vpack.c.bf16 %v6372_v63, %v6372_v63 }
0x1d50   :  { %3372 = vmatmul.mubr.bf16.vlgmr.msra.gmra.mxu1 %v3241_v0 }
0x1d51   :  { %4750 = vmatprep.mubr.msk.bf16.mxu1 %vm5268_vm0, %v5267_v3  ;;  %4747 = vmatpush3.bf16.msra.mxu1 %v5206_v25 }
0x1d52   :  { %4748 = vmatprep.subr.bf16.mxu1 %v5267_v3 }
0x1d55   :  { %4749 = vmatpush3.bf16.msra.mxu1 %v5207_v39 }
0x1d56   :  { %3753 = vmatprep.subr.bf16.mxu1 %v5210_v46 }
0x1e10   :  { %v3373_v9 = vpop.f32.mrf.mxu1 }
0x1e11   :  { %v3384_v28 = vadd.f32 %v3383_v27, %v3373_v9 }
0x1e12   :  { %v3375_v31 = vpop.f32.mrf.mxu1 }
0x1e13   :  { %v3385_v6 = vpack.c.bf16 %v3375_v31, %v3375_v31 }
0x1e14   :  { %v3377_v34 = vpop.f32.mrf.mxu1 }
0x1e15   :  { %4743 = vmatmul.mubr.msk.bf16.vlgmr.msra.gmra.mxu0 %vm181_vm1, %v3385_v6  ;;  %v5233_v6 = vld [vmem:[%s6516_s2 + $0x110] sm:$0xff]   ;;  %s5244_s2 = scalar_lea.vmem %s3870_s27, 128 }
0x1e16   :  { %v3378_v11 = vpop.f32.mrf.mxu1  ;;  %3547 = vmatpush1.bf16.msra.mxu0 %v5182_v5  ;;  %3578 = vmatprep.mubr.bf16.mxu0 %v5266_v2  ;;  %p5245_p0 = scmp.ne.s32.totalorder %s3870_s27, %s5244_s2  ;;  %p5250_p2 = scmp.lt.s32.totalorder %s5244_s2, %s5244_s2 }
0x1e17   :  { %3548 = vmatprep.subr.bf16.mxu0 %v5187_v10 }
0x1e18   :  { %p5251_p3 = por %p5250_p2, %p5249_p1 }
0x1e1a   :  { %3549 = vmatpush1.bf16.msra.mxu0 %v5185_v13  ;;  %v3797_v13 = vrot.slane %v6439_v26, %v5504_v35  ;;  %p5252_p4 = pnand %p5251_p3, %p5245_p0 }
0x1e1b   :  { %3550 = vmatprep.subr.bf16.mxu0 %v5190_v38 }
0x1e1e   :  { %3551 = vmatpush1.bf16.msra.mxu0 %v5188_v14 }
0x1e1f   :  { %3552 = vmatprep.subr.bf16.mxu0 %v5193_v16 }
0x1e22   :  { %3553 = vmatpush1.bf16.msra.mxu0 %v5191_v41 }
0x1e23   :  { %3554 = vmatprep.subr.bf16.mxu0 %v5196_v45 }
0x1e26   :  { %3555 = vmatpush1.bf16.msra.mxu0 %v5194_v17 }
0x1e27   :  { %3556 = vmatprep.subr.bf16.mxu0 %v5199_v47 }
0x1e2a   :  { %3557 = vmatpush1.bf16.msra.mxu0 %v5197_v20 }
0x1e2b   :  { %3558 = vmatprep.subr.bf16.mxu0 %v5202_v21 }
0x1e2e   :  { %3559 = vmatpush1.bf16.msra.mxu0 %v5200_v22 }
0x1e2f   :  { %3560 = vmatprep.subr.bf16.mxu0 %v5205_v23 }
0x1e32   :  { %3561 = vmatpush1.bf16.msra.mxu0 %v5203_v24 }
0x1e33   :  { %4754 = vmatprep.subr.bf16.mxu0 %v5267_v3 }
0x1ed5   :  { %v3440_v29 = vpop.f32.mrf.mxu0 }
0x1ed6   :  { %v3446_v30 = vadd.f32 %v3440_v29, %v3384_v28 }
0x1ed7   :  { %v4744_v32 = vpop.f32.mrf.mxu0 }
0x1ed8   :  { %v3447_v33 = vmax.f32 %v3446_v30, 0.0 }
0x1ed9   :  { %v3443_v36 = vpop.f32.mrf.mxu0 }
0x1eda   :  { %v3448_v4 = vpack.c.bf16 %v3447_v33, %v3447_v33 }
0x1edb   :  { %v4745_v37 = vpop.f32.mrf.mxu0 }
0x1edc   :  { %3579 = vmatmul.mubr.bf16.vlgmr.msra.gmra.mxu0 %v3448_v4 }
0x1edd   :  { %4758 = vmatprep.mubr.msk.bf16.mxu0 %vm5268_vm0, %v5267_v3  ;;  %4755 = vmatpush3.bf16.msra.mxu0 %v5232_v59 }
0x1ede   :  { %4756 = vmatprep.subr.bf16.mxu0 %v5267_v3 }
0x1ee1   :  { %4757 = vmatpush3.bf16.msra.mxu0 %v5233_v6 }
0x1f9c   :  { %v3580_v7 = vpop.f32.mrf.mxu0 }
0x1f9d   :  { %v3591_v61 = vadd.f32 %v3590_v60, %v3580_v7 }
0x1f9e   :  { %v3582_v40 = vpop.f32.mrf.mxu0 }
0x1f9f   :  { %v3592_v12 = vpack.c.bf16 %v3582_v40, %v3582_v40 }
0x1fa0   :  { %v3584_v44 = vpop.f32.mrf.mxu0 }
0x1fa1   :  { %4751 = vmatmul.mubr.msk.bf16.vlgmr.msra.gmra.mxu1 %vm181_vm1, %v3592_v12 }
0x1fa2   :  { %v3585_v15 = vpop.f32.mrf.mxu0  ;;  %3754 = vmatpush1.bf16.msra.mxu1 %v5208_v42  ;;  %3785 = vmatprep.mubr.bf16.mxu1 %v5266_v2  ;;  %v5217_v2 = vld [vmem:[%s6515_s1 + $0x8c0] ss:$8 sps:$4 sm:$0xff]  }
0x1fa3   :  { %3755 = vmatprep.subr.bf16.mxu1 %v5213_v43 }
0x1fa6   :  { %3756 = vmatpush1.bf16.msra.mxu1 %v5211_v48 }
0x1fa7   :  { %3757 = vmatprep.subr.bf16.mxu1 %v5216_v49 }
0x1faa   :  { %3758 = vmatpush1.bf16.msra.mxu1 %v5214_v19 }
0x1fab   :  { %3759 = vmatprep.subr.bf16.mxu1 %v5219_v50 }
0x1fae   :  { %3760 = vmatpush1.bf16.msra.mxu1 %v5217_v2 }
0x1faf   :  { %3761 = vmatprep.subr.bf16.mxu1 %v5222_v51 }
0x1fb2   :  { %3762 = vmatpush1.bf16.msra.mxu1 %v5220_v52 }
0x1fb3   :  { %3763 = vmatprep.subr.bf16.mxu1 %v5225_v53 }
0x1fb6   :  { %3764 = vmatpush1.bf16.msra.mxu1 %v5223_v54 }
0x1fb7   :  { %3765 = vmatprep.subr.bf16.mxu1 %v5228_v55 }
0x1fba   :  { %3766 = vmatpush1.bf16.msra.mxu1 %v5226_v56 }
0x1fbb   :  { %3767 = vmatprep.subr.bf16.mxu1 %v5231_v57 }
0x1fbe   :  { %3768 = vmatpush1.bf16.msra.mxu1 %v5229_v58 }
0x2061   :  { %v3647_v62 = vpop.f32.mrf.mxu1 }
0x2062   :  { %v3653_v0 = vadd.f32 %v3647_v62, %v3591_v61 }
0x2063   :  { %v4752_v1 = vpop.f32.mrf.mxu1 }
0x2064   :  { %v3654_v8 = vmax.f32 %v3653_v0, 0.0 }
0x2065   :  { %v3650_v9 = vpop.f32.mrf.mxu1 }
0x2066   :  { %v3655_v31 = vpack.c.bf16 %v3654_v8, %v3654_v8 }
0x2067   :  { %v4753_v5 = vpop.f32.mrf.mxu1 }
0x2068   :  { %3786 = vmatmul.mubr.bf16.vlgmr.msra.gmra.mxu1 %v3655_v31 }
0x2128   :  { %v3787_v10 = vpop.f32.mrf.mxu1 }
0x2129   :  { %v3798_v38 = vadd.f32 %v3797_v13, %v3787_v10 }
0x212a   :  { %v3789_v34 = vpop.f32.mrf.mxu1 }
0x212b   :  { %v3799_v3 = vpack.c.bf16 %v3789_v34, %v3789_v34 }
0x212c   :  { %v3791_v11 = vpop.f32.mrf.mxu1 }
0x212d   :  { %4759 = vmatmul.mubr.msk.bf16.vlgmr.msra.gmra.mxu0 %vm181_vm1, %v3799_v3 }
0x212e   :  { %v3792_v18 = vpop.f32.mrf.mxu1 }
0x21ed   :  { %v3854_v14 = vpop.f32.mrf.mxu0 }
0x21ee   :  { %v3860_v16 = vadd.f32 %v3854_v14, %v3798_v38 }
0x21ef   :  { %v4760_v41 = vpop.f32.mrf.mxu0 }
0x21f0   :  { %v3861_v45 = vadd.f32 %v3860_v16, %v6372_v63 }
0x21f1   :  { %v3857_v17 = vpop.f32.mrf.mxu0 }
0x21f2   :  { %3862 = vst [vmem:[#allocation2] sm:$0xff] %v3861_v45 }
0x21f3   :  { %v4761_v47 = vpop.f32.mrf.mxu0 }
0x21f4   :  { %5255 = shalt.err (!%p5252_p4)
}
0x21f5   :  { %3872 = dma.vmem_to_hbm [thread:$0]  %s3870_s27, 128, %s6518_s4, [#allocation3]  }
0x21f6   :  { %5264 = dma.done.wait [#allocation3], 128  }
0x21f7   :  { %5265 = vsyncadd [#allocation3], 4294967168 }
0x21f8   :  { %3876 = vsyncpa [#allocation3], 1 }

</bundles_post_ra>
